<compile_context>
chip_gen: v6e
topology: v6e:2x2x1
jax: 0.10.0
libtpu: 0.0.40
codegen_flags: <defaults>
</compile_context>

<pallas_src>
import jax
import jax.numpy as jnp
from jax import lax
from jax.experimental import pallas as pl
from jax.experimental.pallas import tpu as pltpu

D_MODEL = 32
D_FF = 4 * D_MODEL            # module default: d_ff = d_ff or 4 * d_model
PACK = 4                      # d_model rows packed per 128-lane vreg row (4 * 32 = 128)
DP = PACK * D_MODEL           # 128 packed lanes
FFP = PACK * D_FF             # 512 packed hidden lanes
MAX_TR = 2048                 # max (unpacked) rows per grid step, multiple of 32
EPS = 1e-5                    # nn.LayerNorm default eps


def _seg_mean_hilo(v, m2):
    """Near-f32-exact per-32-lane-segment mean of f32 v.

    One K=256 bf16 matmul: concat([hi, lo]) @ vstack([m, m]) == hi@m + lo@m, where hi is
    the bf16 rounding of v and lo the residual.  Single MXU pass on v6e/v7x (256-deep).
    """
    hi = v.astype(jnp.bfloat16)
    lo = (v - hi.astype(jnp.float32)).astype(jnp.bfloat16)
    return jnp.dot(jnp.concatenate([hi, lo], axis=-1), m2,
                   preferred_element_type=jnp.float32)


def _seg_mean_fast(v, m1):
    """Single-pass bf16 per-segment mean (used for the variance of centered values)."""
    return jnp.dot(v.astype(jnp.bfloat16), m1, preferred_element_type=jnp.float32)


def _seg_layernorm(v, m2, m1, g, b):
    """LayerNorm over each 32-lane segment (i.e. per original d_model row)."""
    mu = _seg_mean_hilo(v, m2)
    xc = v - mu
    var = _seg_mean_fast(xc * xc, m1)       # centered -> one native bf16 pass is enough
    return xc * lax.rsqrt(var + EPS) * g + b


def _encoder_layer_kernel(x_ref, wm_ref, m2_ref, w1_ref, w2_ref, vrow_ref, bff_ref, o_ref):
    x = x_ref[...]                                  # (TRP, 128) f32: 4 packed d_model rows
    wm = wm_ref[...]                                # (128, 128) bf16 block-diag mamba weight
    m2 = m2_ref[...]                                # (256, 128) bf16: vstack(ones/32, ones/32)
    m1 = m2[:DP, :]                                 # (128, 128) bf16 block-diag ones/32
    vrow = vrow_ref[...]                            # (16, 128) f32 packed per-channel vectors
    bff = bff_ref[...]                              # (3, 512) f32 packed conv1 biases
    bm = vrow[0:1, :]
    g1, b1 = vrow[1:2, :], vrow[2:3, :]
    g2, b2 = vrow[3:4, :], vrow[4:5, :]

    # new_x = mamba(x) placeholder (fused); x = x + dropout(new_x)  (dropout = identity)
    new_x = jnp.dot(x.astype(jnp.bfloat16), wm, preferred_element_type=jnp.float32) + bm
    x = x + new_x
    x1 = _seg_layernorm(x, m2, m1, g1, b1)          # norm1

    # resblock1..3 (identity=True): y = LN(y + conv2(relu(conv1(y))))  (1x1 convs = matmuls)
    y = x1
    for k in range(3):                              # static unroll over the 3 resblocks
        h = jnp.dot(y.astype(jnp.bfloat16), w1_ref[k],
                    preferred_element_type=jnp.float32) + bff[k:k + 1, :]
        h = jnp.maximum(h, 0.0).astype(jnp.bfloat16)     # relu; bf16 hidden halves vst/vld
        h = jnp.dot(h, w2_ref[k], preferred_element_type=jnp.float32) + vrow[11 + k:12 + k, :]
        y = _seg_layernorm(y + h, m2, m1, vrow[5 + k:6 + k, :], vrow[8 + k:9 + k, :])

    # return norm2(x + y)
    o_ref[...] = _seg_layernorm(x1 + y, m2, m1, g2, b2).astype(o_ref.dtype)


def _choose_tile_rows(r):
    """Pick the (unpacked) row-tile size.

    Always an even number of >= 2 grid steps when r <= 2*MAX_TR, so the v7x megacore can
    split the 'parallel' row axis into balanced halves; bigger inputs get balanced tiles
    capped at MAX_TR (amortizes the ~0.35 us/step overhead; VMEM is not the constraint).
    Multiple of 32 so the packed tile (TR/4, 128) is (8, 128)-aligned.
    """
    n_steps = max(2, 2 * pl.cdiv(r, 2 * MAX_TR))    # even, >= 2
    tr = ((pl.cdiv(r, n_steps) + 31) // 32) * 32
    return max(32, min(tr, MAX_TR))


def _run_packed_kernel(xp, pk, trp):
    rp, dp = xp.shape
    assert dp == DP and rp % trp == 0
    grid = (rp // trp,)
    return pl.pallas_call(
        _encoder_layer_kernel,
        out_shape=jax.ShapeDtypeStruct((rp, dp), jnp.float32),
        grid_spec=pltpu.PrefetchScalarGridSpec(
            num_scalar_prefetch=0,
            grid=grid,
            in_specs=[
                pl.BlockSpec((trp, DP), lambda i: (i, 0)),          # packed x rows
                pl.BlockSpec((DP, DP), lambda i: (0, 0)),           # mamba W (block-diag, bf16)
                pl.BlockSpec((2 * DP, DP), lambda i: (0, 0)),       # stacked ones/32 (bf16)
                pl.BlockSpec((3, DP, FFP), lambda i: (0, 0, 0)),    # conv1 weights (bf16)
                pl.BlockSpec((3, FFP, DP), lambda i: (0, 0, 0)),    # conv2 weights (bf16)
                pl.BlockSpec((16, DP), lambda i: (0, 0)),           # packed (.,32) vectors
                pl.BlockSpec((3, FFP), lambda i: (0, 0)),           # packed conv1 biases
            ],
            out_specs=pl.BlockSpec((trp, DP), lambda i: (i, 0)),
        ),
        compiler_params=pltpu.CompilerParams(
            dimension_semantics=("parallel",),      # row axis is embarrassingly parallel
            vmem_limit_bytes=32 * 1024 * 1024,      # headroom for large row tiles
        ),
    )(xp, pk["wm"], pk["m2"], pk["w1b"], pk["w2b"], pk["vrow"], pk["bff"])


def pack_params(p):
    """Pack raw (PyTorch-layout) params into the lane-dense kernel layout.

    Call ONCE and reuse the result across forward calls (host-side kron/stack is pure
    overhead if repeated per call).
    """
    eye = jnp.eye(PACK, dtype=jnp.float32)
    blk = lambda w: jnp.kron(eye, w)                        # block-diagonal lane packing
    rep = lambda v: jnp.tile(jnp.reshape(v, (-1,)), PACK)   # per-channel vec -> packed lanes
    m = blk(jnp.full((D_MODEL, D_MODEL), 1.0 / D_MODEL, jnp.float32))  # 1/32 exact in bf16
    wm = blk(p["wm"]).astype(jnp.bfloat16)
    m2 = jnp.concatenate([m, m], axis=0).astype(jnp.bfloat16)          # (256, 128)
    w1b = jnp.stack([blk(p["w1"][k]) for k in range(3)]).astype(jnp.bfloat16)
    w2b = jnp.stack([blk(p["w2"][k]) for k in range(3)]).astype(jnp.bfloat16)
    rows = ([rep(p["bm"]), rep(p["g1"]), rep(p["b1"]), rep(p["g2"]), rep(p["b2"])]
            + [rep(p["gn"][k]) for k in range(3)]
            + [rep(p["bn"][k]) for k in range(3)]
            + [rep(p["bw2"][k]) for k in range(3)])
    vrow = jnp.zeros((16, DP), jnp.float32).at[:14].set(jnp.stack(rows))
    bff = jnp.stack([rep(p["bw1"][k]) for k in range(3)])
    return dict(wm=wm, m2=m2, w1b=w1b, w2b=w2b, vrow=vrow, bff=bff)


def encoder_layer_mamba_forward(x_list, pk):
    """Forward of EncoderLayerMamba on a list of (B, L, d_model) tensors (ragged L ok).

    `pk` are packed parameters from pack_params (packed once, reused).
    """
    shapes = [x.shape for x in x_list]
    x_all = jnp.concatenate([x.reshape(-1, D_MODEL) for x in x_list], 0).astype(jnp.float32)
    r = x_all.shape[0]
    tr = _choose_tile_rows(r)
    r_pad = pl.cdiv(r, tr) * tr
    if r_pad != r:
        x_all = jnp.pad(x_all, ((0, r_pad - r), (0, 0)))    # tail rows dropped after the call
    xp = x_all.reshape(r_pad // PACK, DP)                   # lane-dense (4 rows / vreg row)
    out = _run_packed_kernel(xp, pk, tr // PACK).reshape(r_pad, D_MODEL)[:r]
    outs, off, attn = [], 0, None                           # placeholder mamba has no attn
    for (b, l, d) in shapes:
        outs.append(out[off:off + b * l].reshape(b, l, d))
        off += b * l
    return outs, attn


# ----------------------------- pure-JAX f32 reference -----------------------------------

def _ln_ref(v, g, b):
    mu = jnp.mean(v, axis=-1, keepdims=True)
    var = jnp.mean((v - mu) ** 2, axis=-1, keepdims=True)
    return (v - mu) * lax.rsqrt(var + EPS) * g + b


def reference_forward(x_list, p):
    """Exact-f32 reference mirroring the PyTorch forward (eval mode)."""
    dot = lambda a, b: jnp.dot(a, b, precision=lax.Precision.HIGHEST)
    outs = []
    for x in x_list:
        nx = dot(x, p["wm"]) + p["bm"]                      # mamba placeholder
        x1 = _ln_ref(x + nx, p["g1"], p["b1"])
        y = x1
        for k in range(3):
            h = jnp.maximum(dot(y, p["w1"][k]) + p["bw1"][k], 0.0)
            h = dot(h, p["w2"][k]) + p["bw2"][k]
            y = _ln_ref(y + h, p["gn"][k], p["bn"][k])
        outs.append(_ln_ref(x1 + y, p["g2"], p["b2"]))
    return outs, None


def init_params(key):
    ks = jax.random.split(key, 6)
    p = {}
    # mamba placeholder weights (deterministic stand-in for the injected mamba_layer)
    p["wm"] = 0.05 * jax.random.normal(ks[0], (D_MODEL, D_MODEL), jnp.float32)
    p["bm"] = 0.05 * jax.random.normal(ks[1], (D_MODEL,), jnp.float32)
    # outer layer norms (PyTorch init: gamma=1, beta=0)
    p["g1"] = jnp.ones((D_MODEL,), jnp.float32)
    p["b1"] = jnp.zeros((D_MODEL,), jnp.float32)
    p["g2"] = jnp.ones((D_MODEL,), jnp.float32)
    p["b2"] = jnp.zeros((D_MODEL,), jnp.float32)
    # 3 x ResNetBlock_type1(identity=True): conv1 (d_model->d_ff), conv2 (d_ff->d_model), LN.
    # Conv weights stored pre-transposed for row-major (rows, d) matmuls.
    p["w1"] = 0.05 * jax.random.normal(ks[2], (3, D_MODEL, D_FF), jnp.float32)
    p["bw1"] = 0.05 * jax.random.normal(ks[3], (3, D_FF), jnp.float32)
    p["w2"] = 0.05 * jax.random.normal(ks[4], (3, D_FF, D_MODEL), jnp.float32)
    p["bw2"] = 0.05 * jax.random.normal(ks[5], (3, D_MODEL), jnp.float32)
    p["gn"] = jnp.ones((3, D_MODEL), jnp.float32)
    p["bn"] = jnp.zeros((3, D_MODEL), jnp.float32)
    return p


if __name__ == "__main__":
    key = jax.random.PRNGKey(0)
    k_params, k0, k1, k2 = jax.random.split(key, 4)
    params = init_params(k_params)
    pk = pack_params(params)      # pack ONCE; reuse across forward calls (no per-call kron)

    # list of (B, L, d_model) tensors; ragged lengths, incl. B*L not a multiple of 8
    x_list = [
        jax.random.normal(k0, (2, 8, D_MODEL), jnp.float32),
        jax.random.normal(k1, (2, 11, D_MODEL), jnp.float32),
        jax.random.normal(k2, (1, 40, D_MODEL), jnp.float32),
    ]

    outs, attn = encoder_layer_mamba_forward(x_list, pk)
    outs = [jax.block_until_ready(o) for o in outs]

    ref_outs, _ = reference_forward(x_list, params)
    for o, r in zip(outs, ref_outs):
        assert o.shape == r.shape
        # Kernel runs explicit-bf16-operand, f32-accumulate MXU matmuls (incl. a single
        # native bf16 pass for the LN variance), while the reference is exact f32.
        # Agreement is typically a few 1e-3; 2e-2 bounds bf16-class numerics with margin.
        if not jnp.allclose(o, r, rtol=2e-2, atol=2e-2):
            raise AssertionError(
                f"mismatch: max abs diff {float(jnp.max(jnp.abs(o - r)))}")

    print("KERNEL_OK")
</pallas_src>

<mosaic_0001>
module attributes {stable_mosaic.version = 11 : i64} {
  func.func @_encoder_layer_kernel(%arg0: i32, %arg1: memref<16x128xf32, #tpu.memory_space<vmem>>, %arg2: memref<128x128xbf16, #tpu.memory_space<vmem>>, %arg3: memref<256x128xbf16, #tpu.memory_space<vmem>>, %arg4: memref<3x128x512xbf16, #tpu.memory_space<vmem>>, %arg5: memref<3x512x128xbf16, #tpu.memory_space<vmem>>, %arg6: memref<16x128xf32, #tpu.memory_space<vmem>>, %arg7: memref<3x512xf32, #tpu.memory_space<vmem>>, %arg8: memref<16x128xf32, #tpu.memory_space<vmem>>) attributes {dimension_semantics = [#tpu.dimension_semantics<parallel>], iteration_bounds = array<i64: 2>, scalar_prefetch = 0 : i64, scratch_operands = 0 : i64, tpu.core_type = #tpu.core_type<tc>, window_params = [{transform_indices = @transform_0, window_bounds = array<i64: 16, 128>}, {pipeline_mode = #tpu.pipeline_mode<synchronous>, transform_indices = @transform_1, window_bounds = array<i64: 128, 128>}, {pipeline_mode = #tpu.pipeline_mode<synchronous>, transform_indices = @transform_2, window_bounds = array<i64: 256, 128>}, {pipeline_mode = #tpu.pipeline_mode<synchronous>, transform_indices = @transform_3, window_bounds = array<i64: 3, 128, 512>}, {pipeline_mode = #tpu.pipeline_mode<synchronous>, transform_indices = @transform_4, window_bounds = array<i64: 3, 512, 128>}, {pipeline_mode = #tpu.pipeline_mode<synchronous>, transform_indices = @transform_5, window_bounds = array<i64: 16, 128>}, {pipeline_mode = #tpu.pipeline_mode<synchronous>, transform_indices = @transform_6, window_bounds = array<i64: 3, 512>}, {transform_indices = @transform_7, window_bounds = array<i64: 16, 128>}]} {
    %c0 = arith.constant 0 : index
    %c0_0 = arith.constant 0 : index
    %0 = vector.load %arg1[%c0, %c0_0] : memref<16x128xf32, #tpu.memory_space<vmem>>, vector<16x128xf32>
    %c0_1 = arith.constant 0 : index
    %c0_2 = arith.constant 0 : index
    %1 = vector.load %arg2[%c0_1, %c0_2] : memref<128x128xbf16, #tpu.memory_space<vmem>>, vector<128x128xbf16>
    %c0_3 = arith.constant 0 : index
    %c0_4 = arith.constant 0 : index
    %2 = vector.load %arg3[%c0_3, %c0_4] : memref<256x128xbf16, #tpu.memory_space<vmem>>, vector<256x128xbf16>
    %3 = vector.extract_strided_slice %2 {offsets = [0, 0], sizes = [128, 128], strides = [1, 1]} : vector<256x128xbf16> to vector<128x128xbf16>
    %c0_5 = arith.constant 0 : index
    %c0_6 = arith.constant 0 : index
    %4 = vector.load %arg6[%c0_5, %c0_6] : memref<16x128xf32, #tpu.memory_space<vmem>>, vector<16x128xf32>
    %c0_7 = arith.constant 0 : index
    %c0_8 = arith.constant 0 : index
    %5 = vector.load %arg7[%c0_7, %c0_8] : memref<3x512xf32, #tpu.memory_space<vmem>>, vector<3x512xf32>
    %6 = vector.extract_strided_slice %4 {offsets = [0, 0], sizes = [1, 128], strides = [1, 1]} : vector<16x128xf32> to vector<1x128xf32>
    %7 = vector.extract_strided_slice %4 {offsets = [1, 0], sizes = [1, 128], strides = [1, 1]} : vector<16x128xf32> to vector<1x128xf32>
    %8 = vector.extract_strided_slice %4 {offsets = [2, 0], sizes = [1, 128], strides = [1, 1]} : vector<16x128xf32> to vector<1x128xf32>
    %9 = vector.extract_strided_slice %4 {offsets = [3, 0], sizes = [1, 128], strides = [1, 1]} : vector<16x128xf32> to vector<1x128xf32>
    %10 = vector.extract_strided_slice %4 {offsets = [4, 0], sizes = [1, 128], strides = [1, 1]} : vector<16x128xf32> to vector<1x128xf32>
    %11 = arith.truncf %0 : vector<16x128xf32> to vector<16x128xbf16>
    %cst = arith.constant dense<0.000000e+00> : vector<16x128xf32>
    %12 = tpu.matmul %11, %1, %cst {dimension_numbers = #tpu.dot_dimension_numbers<[1], [0], [0], [1], [0, 0, 1, 1], [], []>} : vector<16x128xbf16>, vector<128x128xbf16>, vector<16x128xf32> -> vector<16x128xf32>
    %13 = vector.broadcast %6 : vector<1x128xf32> to vector<16x128xf32>
    %14 = arith.addf %12, %13 : vector<16x128xf32>
    %15 = arith.addf %0, %14 : vector<16x128xf32>
    %16 = arith.truncf %15 : vector<16x128xf32> to vector<16x128xbf16>
    %17 = arith.extf %16 : vector<16x128xbf16> to vector<16x128xf32>
    %18 = arith.subf %15, %17 : vector<16x128xf32>
    %19 = arith.truncf %18 : vector<16x128xf32> to vector<16x128xbf16>
    %20 = tpu.concatenate %16, %19 in 1 : vector<16x128xbf16>, vector<16x128xbf16> -> vector<16x256xbf16>
    %cst_9 = arith.constant dense<0.000000e+00> : vector<16x128xf32>
    %21 = tpu.matmul %20, %2, %cst_9 {dimension_numbers = #tpu.dot_dimension_numbers<[1], [0], [0], [1], [0, 0, 1, 1], [], []>} : vector<16x256xbf16>, vector<256x128xbf16>, vector<16x128xf32> -> vector<16x128xf32>
    %22 = arith.subf %15, %21 : vector<16x128xf32>
    %23 = arith.mulf %22, %22 : vector<16x128xf32>
    %24 = arith.truncf %23 : vector<16x128xf32> to vector<16x128xbf16>
    %cst_10 = arith.constant dense<0.000000e+00> : vector<16x128xf32>
    %25 = tpu.matmul %24, %3, %cst_10 {dimension_numbers = #tpu.dot_dimension_numbers<[1], [0], [0], [1], [0, 0, 1, 1], [], []>} : vector<16x128xbf16>, vector<128x128xbf16>, vector<16x128xf32> -> vector<16x128xf32>
    %cst_11 = arith.constant 9.99999974E-6 : f32
    %26 = vector.broadcast %cst_11 : f32 to vector<16x128xf32>
    %27 = arith.addf %25, %26 : vector<16x128xf32>
    %28 = math.rsqrt %27 : vector<16x128xf32>
    %29 = arith.mulf %22, %28 : vector<16x128xf32>
    %30 = vector.broadcast %7 : vector<1x128xf32> to vector<16x128xf32>
    %31 = arith.mulf %29, %30 : vector<16x128xf32>
    %32 = vector.broadcast %8 : vector<1x128xf32> to vector<16x128xf32>
    %33 = arith.addf %31, %32 : vector<16x128xf32>
    %34 = arith.truncf %33 : vector<16x128xf32> to vector<16x128xbf16>
    %c0_12 = arith.constant 0 : index
    %c0_13 = arith.constant 0 : index
    %c0_14 = arith.constant 0 : index
    %35 = vector.load %arg4[%c0_12, %c0_13, %c0_14] : memref<3x128x512xbf16, #tpu.memory_space<vmem>>, vector<1x128x512xbf16>
    %36 = vector.shape_cast %35 : vector<1x128x512xbf16> to vector<128x512xbf16>
    %cst_15 = arith.constant dense<0.000000e+00> : vector<16x512xf32>
    %37 = tpu.matmul %34, %36, %cst_15 {dimension_numbers = #tpu.dot_dimension_numbers<[1], [0], [0], [1], [0, 0, 1, 1], [], []>} : vector<16x128xbf16>, vector<128x512xbf16>, vector<16x512xf32> -> vector<16x512xf32>
    %38 = vector.extract_strided_slice %5 {offsets = [0, 0], sizes = [1, 512], strides = [1, 1]} : vector<3x512xf32> to vector<1x512xf32>
    %39 = vector.broadcast %38 : vector<1x512xf32> to vector<16x512xf32>
    %40 = arith.addf %37, %39 : vector<16x512xf32>
    %cst_16 = arith.constant 0.000000e+00 : f32
    %41 = vector.broadcast %cst_16 : f32 to vector<16x512xf32>
    %42 = arith.maximumf %40, %41 : vector<16x512xf32>
    %43 = arith.truncf %42 : vector<16x512xf32> to vector<16x512xbf16>
    %c0_17 = arith.constant 0 : index
    %c0_18 = arith.constant 0 : index
    %c0_19 = arith.constant 0 : index
    %44 = vector.load %arg5[%c0_17, %c0_18, %c0_19] : memref<3x512x128xbf16, #tpu.memory_space<vmem>>, vector<1x512x128xbf16>
    %45 = vector.shape_cast %44 : vector<1x512x128xbf16> to vector<512x128xbf16>
    %cst_20 = arith.constant dense<0.000000e+00> : vector<16x128xf32>
    %46 = tpu.matmul %43, %45, %cst_20 {dimension_numbers = #tpu.dot_dimension_numbers<[1], [0], [0], [1], [0, 0, 1, 1], [], []>} : vector<16x512xbf16>, vector<512x128xbf16>, vector<16x128xf32> -> vector<16x128xf32>
    %47 = vector.extract_strided_slice %4 {offsets = [11, 0], sizes = [1, 128], strides = [1, 1]} : vector<16x128xf32> to vector<1x128xf32>
    %48 = vector.broadcast %47 : vector<1x128xf32> to vector<16x128xf32>
    %49 = arith.addf %46, %48 : vector<16x128xf32>
    %50 = arith.addf %33, %49 : vector<16x128xf32>
    %51 = vector.extract_strided_slice %4 {offsets = [5, 0], sizes = [1, 128], strides = [1, 1]} : vector<16x128xf32> to vector<1x128xf32>
    %52 = vector.extract_strided_slice %4 {offsets = [8, 0], sizes = [1, 128], strides = [1, 1]} : vector<16x128xf32> to vector<1x128xf32>
    %53 = arith.truncf %50 : vector<16x128xf32> to vector<16x128xbf16>
    %54 = arith.extf %53 : vector<16x128xbf16> to vector<16x128xf32>
    %55 = arith.subf %50, %54 : vector<16x128xf32>
    %56 = arith.truncf %55 : vector<16x128xf32> to vector<16x128xbf16>
    %57 = tpu.concatenate %53, %56 in 1 : vector<16x128xbf16>, vector<16x128xbf16> -> vector<16x256xbf16>
    %cst_21 = arith.constant dense<0.000000e+00> : vector<16x128xf32>
    %58 = tpu.matmul %57, %2, %cst_21 {dimension_numbers = #tpu.dot_dimension_numbers<[1], [0], [0], [1], [0, 0, 1, 1], [], []>} : vector<16x256xbf16>, vector<256x128xbf16>, vector<16x128xf32> -> vector<16x128xf32>
    %59 = arith.subf %50, %58 : vector<16x128xf32>
    %60 = arith.mulf %59, %59 : vector<16x128xf32>
    %61 = arith.truncf %60 : vector<16x128xf32> to vector<16x128xbf16>
    %cst_22 = arith.constant dense<0.000000e+00> : vector<16x128xf32>
    %62 = tpu.matmul %61, %3, %cst_22 {dimension_numbers = #tpu.dot_dimension_numbers<[1], [0], [0], [1], [0, 0, 1, 1], [], []>} : vector<16x128xbf16>, vector<128x128xbf16>, vector<16x128xf32> -> vector<16x128xf32>
    %cst_23 = arith.constant 9.99999974E-6 : f32
    %63 = vector.broadcast %cst_23 : f32 to vector<16x128xf32>
    %64 = arith.addf %62, %63 : vector<16x128xf32>
    %65 = math.rsqrt %64 : vector<16x128xf32>
    %66 = arith.mulf %59, %65 : vector<16x128xf32>
    %67 = vector.broadcast %51 : vector<1x128xf32> to vector<16x128xf32>
    %68 = arith.mulf %66, %67 : vector<16x128xf32>
    %69 = vector.broadcast %52 : vector<1x128xf32> to vector<16x128xf32>
    %70 = arith.addf %68, %69 : vector<16x128xf32>
    %71 = arith.truncf %70 : vector<16x128xf32> to vector<16x128xbf16>
    %c1 = arith.constant 1 : index
    %c0_24 = arith.constant 0 : index
    %c0_25 = arith.constant 0 : index
    %72 = vector.load %arg4[%c1, %c0_24, %c0_25] : memref<3x128x512xbf16, #tpu.memory_space<vmem>>, vector<1x128x512xbf16>
    %73 = vector.shape_cast %72 : vector<1x128x512xbf16> to vector<128x512xbf16>
    %cst_26 = arith.constant dense<0.000000e+00> : vector<16x512xf32>
    %74 = tpu.matmul %71, %73, %cst_26 {dimension_numbers = #tpu.dot_dimension_numbers<[1], [0], [0], [1], [0, 0, 1, 1], [], []>} : vector<16x128xbf16>, vector<128x512xbf16>, vector<16x512xf32> -> vector<16x512xf32>
    %75 = vector.extract_strided_slice %5 {offsets = [1, 0], sizes = [1, 512], strides = [1, 1]} : vector<3x512xf32> to vector<1x512xf32>
    %76 = vector.broadcast %75 : vector<1x512xf32> to vector<16x512xf32>
    %77 = arith.addf %74, %76 : vector<16x512xf32>
    %cst_27 = arith.constant 0.000000e+00 : f32
    %78 = vector.broadcast %cst_27 : f32 to vector<16x512xf32>
    %79 = arith.maximumf %77, %78 : vector<16x512xf32>
    %80 = arith.truncf %79 : vector<16x512xf32> to vector<16x512xbf16>
    %c1_28 = arith.constant 1 : index
    %c0_29 = arith.constant 0 : index
    %c0_30 = arith.constant 0 : index
    %81 = vector.load %arg5[%c1_28, %c0_29, %c0_30] : memref<3x512x128xbf16, #tpu.memory_space<vmem>>, vector<1x512x128xbf16>
    %82 = vector.shape_cast %81 : vector<1x512x128xbf16> to vector<512x128xbf16>
    %cst_31 = arith.constant dense<0.000000e+00> : vector<16x128xf32>
    %83 = tpu.matmul %80, %82, %cst_31 {dimension_numbers = #tpu.dot_dimension_numbers<[1], [0], [0], [1], [0, 0, 1, 1], [], []>} : vector<16x512xbf16>, vector<512x128xbf16>, vector<16x128xf32> -> vector<16x128xf32>
    %84 = vector.extract_strided_slice %4 {offsets = [12, 0], sizes = [1, 128], strides = [1, 1]} : vector<16x128xf32> to vector<1x128xf32>
    %85 = vector.broadcast %84 : vector<1x128xf32> to vector<16x128xf32>
    %86 = arith.addf %83, %85 : vector<16x128xf32>
    %87 = arith.addf %70, %86 : vector<16x128xf32>
    %88 = vector.extract_strided_slice %4 {offsets = [6, 0], sizes = [1, 128], strides = [1, 1]} : vector<16x128xf32> to vector<1x128xf32>
    %89 = vector.extract_strided_slice %4 {offsets = [9, 0], sizes = [1, 128], strides = [1, 1]} : vector<16x128xf32> to vector<1x128xf32>
    %90 = arith.truncf %87 : vector<16x128xf32> to vector<16x128xbf16>
    %91 = arith.extf %90 : vector<16x128xbf16> to vector<16x128xf32>
    %92 = arith.subf %87, %91 : vector<16x128xf32>
    %93 = arith.truncf %92 : vector<16x128xf32> to vector<16x128xbf16>
    %94 = tpu.concatenate %90, %93 in 1 : vector<16x128xbf16>, vector<16x128xbf16> -> vector<16x256xbf16>
    %cst_32 = arith.constant dense<0.000000e+00> : vector<16x128xf32>
    %95 = tpu.matmul %94, %2, %cst_32 {dimension_numbers = #tpu.dot_dimension_numbers<[1], [0], [0], [1], [0, 0, 1, 1], [], []>} : vector<16x256xbf16>, vector<256x128xbf16>, vector<16x128xf32> -> vector<16x128xf32>
    %96 = arith.subf %87, %95 : vector<16x128xf32>
    %97 = arith.mulf %96, %96 : vector<16x128xf32>
    %98 = arith.truncf %97 : vector<16x128xf32> to vector<16x128xbf16>
    %cst_33 = arith.constant dense<0.000000e+00> : vector<16x128xf32>
    %99 = tpu.matmul %98, %3, %cst_33 {dimension_numbers = #tpu.dot_dimension_numbers<[1], [0], [0], [1], [0, 0, 1, 1], [], []>} : vector<16x128xbf16>, vector<128x128xbf16>, vector<16x128xf32> -> vector<16x128xf32>
    %cst_34 = arith.constant 9.99999974E-6 : f32
    %100 = vector.broadcast %cst_34 : f32 to vector<16x128xf32>
    %101 = arith.addf %99, %100 : vector<16x128xf32>
    %102 = math.rsqrt %101 : vector<16x128xf32>
    %103 = arith.mulf %96, %102 : vector<16x128xf32>
    %104 = vector.broadcast %88 : vector<1x128xf32> to vector<16x128xf32>
    %105 = arith.mulf %103, %104 : vector<16x128xf32>
    %106 = vector.broadcast %89 : vector<1x128xf32> to vector<16x128xf32>
    %107 = arith.addf %105, %106 : vector<16x128xf32>
    %108 = arith.truncf %107 : vector<16x128xf32> to vector<16x128xbf16>
    %c2 = arith.constant 2 : index
    %c0_35 = arith.constant 0 : index
    %c0_36 = arith.constant 0 : index
    %109 = vector.load %arg4[%c2, %c0_35, %c0_36] : memref<3x128x512xbf16, #tpu.memory_space<vmem>>, vector<1x128x512xbf16>
    %110 = vector.shape_cast %109 : vector<1x128x512xbf16> to vector<128x512xbf16>
    %cst_37 = arith.constant dense<0.000000e+00> : vector<16x512xf32>
    %111 = tpu.matmul %108, %110, %cst_37 {dimension_numbers = #tpu.dot_dimension_numbers<[1], [0], [0], [1], [0, 0, 1, 1], [], []>} : vector<16x128xbf16>, vector<128x512xbf16>, vector<16x512xf32> -> vector<16x512xf32>
    %112 = vector.extract_strided_slice %5 {offsets = [2, 0], sizes = [1, 512], strides = [1, 1]} : vector<3x512xf32> to vector<1x512xf32>
    %113 = vector.broadcast %112 : vector<1x512xf32> to vector<16x512xf32>
    %114 = arith.addf %111, %113 : vector<16x512xf32>
    %cst_38 = arith.constant 0.000000e+00 : f32
    %115 = vector.broadcast %cst_38 : f32 to vector<16x512xf32>
    %116 = arith.maximumf %114, %115 : vector<16x512xf32>
    %117 = arith.truncf %116 : vector<16x512xf32> to vector<16x512xbf16>
    %c2_39 = arith.constant 2 : index
    %c0_40 = arith.constant 0 : index
    %c0_41 = arith.constant 0 : index
    %118 = vector.load %arg5[%c2_39, %c0_40, %c0_41] : memref<3x512x128xbf16, #tpu.memory_space<vmem>>, vector<1x512x128xbf16>
    %119 = vector.shape_cast %118 : vector<1x512x128xbf16> to vector<512x128xbf16>
    %cst_42 = arith.constant dense<0.000000e+00> : vector<16x128xf32>
    %120 = tpu.matmul %117, %119, %cst_42 {dimension_numbers = #tpu.dot_dimension_numbers<[1], [0], [0], [1], [0, 0, 1, 1], [], []>} : vector<16x512xbf16>, vector<512x128xbf16>, vector<16x128xf32> -> vector<16x128xf32>
    %121 = vector.extract_strided_slice %4 {offsets = [13, 0], sizes = [1, 128], strides = [1, 1]} : vector<16x128xf32> to vector<1x128xf32>
    %122 = vector.broadcast %121 : vector<1x128xf32> to vector<16x128xf32>
    %123 = arith.addf %120, %122 : vector<16x128xf32>
    %124 = arith.addf %107, %123 : vector<16x128xf32>
    %125 = vector.extract_strided_slice %4 {offsets = [7, 0], sizes = [1, 128], strides = [1, 1]} : vector<16x128xf32> to vector<1x128xf32>
    %126 = vector.extract_strided_slice %4 {offsets = [10, 0], sizes = [1, 128], strides = [1, 1]} : vector<16x128xf32> to vector<1x128xf32>
    %127 = arith.truncf %124 : vector<16x128xf32> to vector<16x128xbf16>
    %128 = arith.extf %127 : vector<16x128xbf16> to vector<16x128xf32>
    %129 = arith.subf %124, %128 : vector<16x128xf32>
    %130 = arith.truncf %129 : vector<16x128xf32> to vector<16x128xbf16>
    %131 = tpu.concatenate %127, %130 in 1 : vector<16x128xbf16>, vector<16x128xbf16> -> vector<16x256xbf16>
    %cst_43 = arith.constant dense<0.000000e+00> : vector<16x128xf32>
    %132 = tpu.matmul %131, %2, %cst_43 {dimension_numbers = #tpu.dot_dimension_numbers<[1], [0], [0], [1], [0, 0, 1, 1], [], []>} : vector<16x256xbf16>, vector<256x128xbf16>, vector<16x128xf32> -> vector<16x128xf32>
    %133 = arith.subf %124, %132 : vector<16x128xf32>
    %134 = arith.mulf %133, %133 : vector<16x128xf32>
    %135 = arith.truncf %134 : vector<16x128xf32> to vector<16x128xbf16>
    %cst_44 = arith.constant dense<0.000000e+00> : vector<16x128xf32>
    %136 = tpu.matmul %135, %3, %cst_44 {dimension_numbers = #tpu.dot_dimension_numbers<[1], [0], [0], [1], [0, 0, 1, 1], [], []>} : vector<16x128xbf16>, vector<128x128xbf16>, vector<16x128xf32> -> vector<16x128xf32>
    %cst_45 = arith.constant 9.99999974E-6 : f32
    %137 = vector.broadcast %cst_45 : f32 to vector<16x128xf32>
    %138 = arith.addf %136, %137 : vector<16x128xf32>
    %139 = math.rsqrt %138 : vector<16x128xf32>
    %140 = arith.mulf %133, %139 : vector<16x128xf32>
    %141 = vector.broadcast %125 : vector<1x128xf32> to vector<16x128xf32>
    %142 = arith.mulf %140, %141 : vector<16x128xf32>
    %143 = vector.broadcast %126 : vector<1x128xf32> to vector<16x128xf32>
    %144 = arith.addf %142, %143 : vector<16x128xf32>
    %145 = arith.addf %33, %144 : vector<16x128xf32>
    %146 = arith.truncf %145 : vector<16x128xf32> to vector<16x128xbf16>
    %147 = arith.extf %146 : vector<16x128xbf16> to vector<16x128xf32>
    %148 = arith.subf %145, %147 : vector<16x128xf32>
    %149 = arith.truncf %148 : vector<16x128xf32> to vector<16x128xbf16>
    %150 = tpu.concatenate %146, %149 in 1 : vector<16x128xbf16>, vector<16x128xbf16> -> vector<16x256xbf16>
    %cst_46 = arith.constant dense<0.000000e+00> : vector<16x128xf32>
    %151 = tpu.matmul %150, %2, %cst_46 {dimension_numbers = #tpu.dot_dimension_numbers<[1], [0], [0], [1], [0, 0, 1, 1], [], []>} : vector<16x256xbf16>, vector<256x128xbf16>, vector<16x128xf32> -> vector<16x128xf32>
    %152 = arith.subf %145, %151 : vector<16x128xf32>
    %153 = arith.mulf %152, %152 : vector<16x128xf32>
    %154 = arith.truncf %153 : vector<16x128xf32> to vector<16x128xbf16>
    %cst_47 = arith.constant dense<0.000000e+00> : vector<16x128xf32>
    %155 = tpu.matmul %154, %3, %cst_47 {dimension_numbers = #tpu.dot_dimension_numbers<[1], [0], [0], [1], [0, 0, 1, 1], [], []>} : vector<16x128xbf16>, vector<128x128xbf16>, vector<16x128xf32> -> vector<16x128xf32>
    %cst_48 = arith.constant 9.99999974E-6 : f32
    %156 = vector.broadcast %cst_48 : f32 to vector<16x128xf32>
    %157 = arith.addf %155, %156 : vector<16x128xf32>
    %158 = math.rsqrt %157 : vector<16x128xf32>
    %159 = arith.mulf %152, %158 : vector<16x128xf32>
    %160 = vector.broadcast %9 : vector<1x128xf32> to vector<16x128xf32>
    %161 = arith.mulf %159, %160 : vector<16x128xf32>
    %162 = vector.broadcast %10 : vector<1x128xf32> to vector<16x128xf32>
    %163 = arith.addf %161, %162 : vector<16x128xf32>
    %c0_49 = arith.constant 0 : index
    %c0_50 = arith.constant 0 : index
    %164 = vector.load %arg8[%c0_49, %c0_50] : memref<16x128xf32, #tpu.memory_space<vmem>>, vector<16x128xf32>
    tpu.vector_store %arg8[%c0_49, %c0_50], %163 {strides = array<i32>} : memref<16x128xf32, #tpu.memory_space<vmem>>, vector<16x128xf32>,
    return
  }
  func.func @transform_0(%arg0: i32) -> (i32, i32) {
    %c0_i32 = arith.constant 0 : i32
    %c0_i32_0 = arith.constant 0 : i32
    return %arg0, %c0_i32 : i32, i32
  }
  func.func @transform_1(%arg0: i32) -> (i32, i32) {
    %c0_i32 = arith.constant 0 : i32
    %c0_i32_0 = arith.constant 0 : i32
    %c0_i32_1 = arith.constant 0 : i32
    return %c0_i32, %c0_i32_0 : i32, i32
  }
  func.func @transform_2(%arg0: i32) -> (i32, i32) {
    %c0_i32 = arith.constant 0 : i32
    %c0_i32_0 = arith.constant 0 : i32
    %c0_i32_1 = arith.constant 0 : i32
    return %c0_i32, %c0_i32_0 : i32, i32
  }
  func.func @transform_3(%arg0: i32) -> (i32, i32, i32) {
    %c0_i32 = arith.constant 0 : i32
    %c0_i32_0 = arith.constant 0 : i32
    %c0_i32_1 = arith.constant 0 : i32
    %c0_i32_2 = arith.constant 0 : i32
    return %c0_i32, %c0_i32_0, %c0_i32_1 : i32, i32, i32
  }
  func.func @transform_4(%arg0: i32) -> (i32, i32, i32) {
    %c0_i32 = arith.constant 0 : i32
    %c0_i32_0 = arith.constant 0 : i32
    %c0_i32_1 = arith.constant 0 : i32
    %c0_i32_2 = arith.constant 0 : i32
    return %c0_i32, %c0_i32_0, %c0_i32_1 : i32, i32, i32
  }
  func.func @transform_5(%arg0: i32) -> (i32, i32) {
    %c0_i32 = arith.constant 0 : i32
    %c0_i32_0 = arith.constant 0 : i32
    %c0_i32_1 = arith.constant 0 : i32
    return %c0_i32, %c0_i32_0 : i32, i32
  }
  func.func @transform_6(%arg0: i32) -> (i32, i32) {
    %c0_i32 = arith.constant 0 : i32
    %c0_i32_0 = arith.constant 0 : i32
    %c0_i32_1 = arith.constant 0 : i32
    return %c0_i32, %c0_i32_0 : i32, i32
  }
  func.func @transform_7(%arg0: i32) -> (i32, i32) {
    %c0_i32 = arith.constant 0 : i32
    %c0_i32_0 = arith.constant 0 : i32
    return %arg0, %c0_i32 : i32, i32
  }
}

</mosaic_0001>

<bundles_post_ra>
// kernel: tpu_custom_call.1
= control target key start
LH: loop header
LB: loop body
LE: loop exit
PB: predicated region body
PF: predicated region fallthrough
CT: control target
= control target key end

     0   :  { %s5398_s0 = inlined_call_operand.hbm [shape: f32[32,128], index: 0, kind: input, shape index: {}]   ;;  %s5399_s1 = inlined_call_operand.hbm [shape: bf16[128,128], index: 1, kind: input, shape index: {}]   ;;  %s5400_s2 = inlined_call_operand.hbm [shape: bf16[256,128], index: 2, kind: input, shape index: {}]   ;;  %s5401_s3 = inlined_call_operand.hbm [shape: bf16[3,128,512], index: 3, kind: input, shape index: {}]   ;;  %s5402_s4 = inlined_call_operand.hbm [shape: bf16[3,512,128], index: 4, kind: input, shape index: {}]   ;;  %s5403_s5 = inlined_call_operand.hbm [shape: f32[16,128], index: 5, kind: input, shape index: {}]   ;;  %s5404_s6 = inlined_call_operand.hbm [shape: f32[3,512], index: 6, kind: input, shape index: {}]   ;;  %s5405_s7 = inlined_call_operand.hbm [shape: f32[32,128], index: 7, kind: output, shape index: {}]  }
   0x1   :  { %5412 = sst [smem:[#allocation20_spill]] %s5399_s1 }
   0x2   :  { %12 = vsyncpa [#allocation3], 0 }
   0x3   :  { %14 = vsyncpa [#allocation3 + $0x1], 0 }
   0x4   :  { %15 = vsyncpa [#allocation6], 0 }
   0x5   :  { %16 = vsyncpa [#allocation9], 0 }
   0x6   :  { %17 = vsyncpa [#allocation12], 0 }
   0x7   :  { %18 = vsyncpa [#allocation4], 0 }
   0x8   :  { %20 = vsyncpa [#allocation4 + $0x1], 0  ;;  %s4754_s24 = smov 0   ;;  %s4756_s25 = smov 0  }
   0x9   :  { %s4758_s26 = smov 0   ;;  %s4760_s27 = smov 0  }
   0xa LB: > { %s4695_s28 = smov [#allocation5]   ;;  %s4775_s30 = sadd.s32 4294967295, %s4693_s27   ;;  %s4693_s27 = sphi %s4760_s27, %s5438_s27   ;;  %s4689_s26 = sphi %s4758_s26, %s5437_s26   ;;  %s4685_s25 = sphi %s4756_s25, %s5436_s25   ;;  %s4681_s24 = sphi %s4754_s24, %s5435_s24  }
   0xb   : > { %s221_s29 = sshll.u32 %s4695_s28, 4  ;;  %p3344_p0 = scmp.ge.s32.totalorder %s4693_s27, 1  ;;  %s222_s29 = int_to_ptr.vmem [resolvable:$true] %s221_s29 }
   0xc   : > { %p5408_p1 = scmp.eq.s32.totalorder %s4775_s30, 0  ;;  %p209_p2 = scmp.lt.s32.totalorder %s4693_s27, 3 }
   0xd   : > { %s4696_s9 = smov [#allocation8]   ;;  %s4697_s12 = smov [#allocation11]  }
   0xe   : > { %p4780_p3 = pnand %p3344_p0, %p209_p2  ;;  %s247_s10 = sshll.u32 %s4696_s9, 4  ;;  %s4793_s10 = int_to_ptr.vmem [resolvable:$true] %s247_s10 }
   0xf   : > { %s4795_s13 = sshll.u32 %s4697_s12, 4  ;;  %s4444_s15 = scalar_lea.vmem %s222_s29, 1024  ;;  %s274_s13 = int_to_ptr.vmem [resolvable:$true] %s4795_s13 }
  0x10   : > { %s5413_s8 = scalar_select %p4780_p3, 1, 0 }
  0x11   : > { %p4031_p5 = pneg %p4780_p3  ;;  %p4445_p8 = scmp.ne.s32.totalorder %s222_s29, %s4444_s15 }
  0x12   : > { %p4452_p11 = scmp.lt.s32.totalorder %s222_s29, %s222_s29  ;;  %p4453_p12 = scmp.lt.s32.totalorder %s4444_s15, %s4444_s15 }
  0x13   : > { %p4789_p6 = pnand %p4031_p5, %p5408_p1 }
  0x14   : > { %p4454_p13 = por %p4453_p12, %p4452_p11 }
  0x15   : > { %p4799_p7 = pneg %p4789_p6 }
  0x17   : > { %p4447_p9 = pnand %p4445_p8, %p4799_p7 }
  0x19   : > { %p4448_p10 = pneg %p4447_p9 }
  0x1b   : > { %p4455_p0 = pnand %p4454_p13, %p4448_p10 }
  0x1d   : > { %4458 = shalt.err (!%p4455_p0)
}
  0x1e   : > { %s4698_s16 = smov 64   ;;  %s4699_s17 = smov 4  }
  0x1f   : > { %s5416_s1 = sld [smem:[#allocation20_spill]]  ;;  %s4470_s20 = scalar_lea.vmem %s4793_s10, 12288 }
  0x20   : > { %p4471_p2 = scmp.ne.s32.totalorder %s4793_s10, %s4470_s20  ;;  %p4478_p9 = scmp.lt.s32.totalorder %s4793_s10, %s4793_s10 }
  0x21   : > { %p4479_p10 = scmp.lt.s32.totalorder %s4470_s20, %s4470_s20 }
  0x22   : > { %p4473_p5 = pnand %p4471_p2, %p4799_p7 }
  0x23   : > { %p4480_p11 = por %p4479_p10, %p4478_p9 }
  0x24   : > { %p4474_p8 = pneg %p4473_p5 }
  0x25   : > { %4034 = dma.hbm_to_vmem [thread:$0]  (!%p4789_p6), %s5416_s1, 1024, %s222_s29, [#allocation6], %s4698_s16, %s4698_s16, %s4699_s17  }
  0x26   : > { %p4481_p12 = pnand %p4480_p11, %p4474_p8 }
  0x28   : > { %4484 = shalt.err (!%p4481_p12)
}
  0x29   : > { %s4700_s21 = smov 256   ;;  %s4701_s22 = smov 16  }
  0x2a   : > { %4040 = dma.hbm_to_vmem [thread:$0]  (!%p4789_p6), %s5401_s3, 12288, %s4793_s10, [#allocation9], %s4700_s21, %s4700_s21, %s4701_s22  }
  0x2b   : > { %s4496_s29 = scalar_lea.vmem %s274_s13, 256  ;;  %p4504_p5 = scmp.lt.s32.totalorder %s274_s13, %s274_s13 }
  0x2c   : > { %p4497_p13 = scmp.ne.s32.totalorder %s274_s13, %s4496_s29  ;;  %p4505_p8 = scmp.lt.s32.totalorder %s4496_s29, %s4496_s29 }
  0x2e   : > { %p4499_p0 = pnand %p4497_p13, %p4799_p7  ;;  %p4506_p9 = por %p4505_p8, %p4504_p5 }
  0x30   : > { %p4500_p2 = pneg %p4499_p0 }
  0x32   : > { %p4507_p10 = pnand %p4506_p9, %p4500_p2 }
  0x34   : > { %4510 = shalt.err (!%p4507_p10)
}
  0x35   : > { %s5406_s9 = smov 128   ;;  %s5407_s12 = smov 8  }
  0x36   : > { %4046 = dma.hbm_to_vmem [thread:$0]  (!%p4789_p6), %s5403_s5, 256, %s274_s13, [#allocation12], %s5406_s9, %s5406_s9, %s5407_s12  }
  0x37   : > { %s4704_s18 = smov [#allocation7]   ;;  %s4705_s20 = smov [#allocation10]  }
  0x38   : > { %s234_s19 = sshll.u32 %s4704_s18, 4  ;;  %s260_s21 = sshll.u32 %s4705_s20, 4  ;;  %s235_s19 = int_to_ptr.vmem [resolvable:$true] %s234_s19  ;;  %s261_s21 = int_to_ptr.vmem [resolvable:$true] %s260_s21 }
  0x39   : > { %s4522_s22 = scalar_lea.vmem %s235_s19, 2048  ;;  %p4530_p0 = scmp.lt.s32.totalorder %s235_s19, %s235_s19 }
  0x3a   : > { %p4523_p11 = scmp.ne.s32.totalorder %s235_s19, %s4522_s22  ;;  %p4531_p2 = scmp.lt.s32.totalorder %s4522_s22, %s4522_s22 }
  0x3c   : > { %p4525_p12 = pnand %p4523_p11, %p4799_p7  ;;  %p4532_p5 = por %p4531_p2, %p4530_p0 }
  0x3e   : > { %p4526_p13 = pneg %p4525_p12 }
  0x40   : > { %p4533_p8 = pnand %p4532_p5, %p4526_p13 }
  0x42   : > { %4536 = shalt.err (!%p4533_p8)
}
  0x43   : > { %4037 = dma.hbm_to_vmem [thread:$0]  (!%p4789_p6), %s5400_s2, 2048, %s235_s19, [#allocation6], %s4698_s16, %s4698_s16, %s4699_s17  }
  0x44   : > { %s4548_s28 = scalar_lea.vmem %s261_s21, 12288  ;;  %p4556_p12 = scmp.lt.s32.totalorder %s261_s21, %s261_s21 }
  0x45   : > { %p4549_p9 = scmp.ne.s32.totalorder %s261_s21, %s4548_s28  ;;  %p4557_p0 = scmp.lt.s32.totalorder %s4548_s28, %s4548_s28 }
  0x47   : > { %p4551_p10 = pnand %p4549_p9, %p4799_p7  ;;  %p4558_p13 = por %p4557_p0, %p4556_p12 }
  0x49   : > { %p4552_p11 = pneg %p4551_p10 }
  0x4b   : > { %p4559_p2 = pnand %p4558_p13, %p4552_p11 }
  0x4d   : > { %4562 = shalt.err (!%p4559_p2)
}
  0x4e   : > { %4043 = dma.hbm_to_vmem [thread:$0]  (!%p4789_p6), %s5402_s4, 12288, %s261_s21, [#allocation9], %s4698_s16, %s4698_s16, %s4699_s17  }
  0x4f   : > { %s4706_s15 = smov [#allocation13]  }
  0x50   : > { %s287_s18 = sshll.u32 %s4706_s15, 4  ;;  %s288_s18 = int_to_ptr.vmem [resolvable:$true] %s287_s18 }
  0x51   : > { %s4574_s19 = scalar_lea.vmem %s288_s18, 256  ;;  %p4582_p10 = scmp.lt.s32.totalorder %s288_s18, %s288_s18 }
  0x52   : > { %p4575_p5 = scmp.ne.s32.totalorder %s288_s18, %s4574_s19  ;;  %p4583_p11 = scmp.lt.s32.totalorder %s4574_s19, %s4574_s19 }
  0x54   : > { %p4577_p8 = pnand %p4575_p5, %p4799_p7  ;;  %p4584_p12 = por %p4583_p11, %p4582_p10 }
  0x56   : > { %p4578_p9 = pneg %p4577_p8 }
  0x58   : > { %p4585_p0 = pnand %p4584_p12, %p4578_p9 }
  0x5a   : > { %4588 = shalt.err (!%p4585_p0)
}
  0x5b   : > { %4049 = dma.hbm_to_vmem [thread:$0]  (!%p4789_p6), %s5404_s6, 256, %s288_s18, [#allocation12]  }
  0x5c   : > { %s3343_s14 = sadd.s32 4294967294, %s4693_s27   ;;  %s4865_s11 = sadd.s32 1, %s4693_s27  }
  0x5d   : > { %s30_s16 = ssub.s32 %s4693_s27, %s4865_s11  ;;  %s33_s17 = sadd.s32 1, %s4689_s26 }
  0x5e   : > { %p31_p7 = scmp.eq.s32.totalorder %s30_s16, 0  ;;  %p40_p13 = scmp.ne.s32.totalorder %s4689_s26, %s4685_s25 }
  0x5f   : > { %p41_p2 = scmp.eq.s32.totalorder %s4693_s27, 0  ;;  %p46_p5 = scmp.ne.s32.totalorder %s4685_s25, %s4681_s24 }
  0x60   : > { %s4876_s21 = scalar_select %p31_p7, %s4689_s26, %s33_s17  }
  0x61   : > { %p4878_p8 = por %p41_p2, %p40_p13  ;;  %p4884_p6 = por %p5408_p1, %p46_p5 }
  0x62   : > { %p196_p9 = scmp.eq.s32.totalorder %s4775_s30, 1  ;;  %p202_p10 = scmp.eq.s32.totalorder %s3343_s14, 1 }
  0x63   : > { %s5418_s23 = scalar_select %p4884_p6, 1, 0 }
  0x64   : > { %p4064_p11 = scmp.lt.s32.totalorder %s4693_s27, 2  ;;  %s298_s28 = sand.u32 1, %s4689_s26  }
  0x65   : > { %p4891_p12 = por %p196_p9, %p40_p13  ;;  %p4895_p0 = por %p202_p10, %p46_p5 }
  0x66   : > { %s3352_s15 = sshll.u32 %s298_s28, 4  ;;  %s3585_s18 = sshll.u32 %s4693_s27, 8 }
  0x67   : > { %s5419_s29 = scalar_select %p4891_p12, 1, 0 }
  0x68   : > { %s5420_s10 = scalar_select %p4895_p0, 1, 0 }
  0x69   : > { %s4903_s22 = scalar_lea.hbm %s5398_s0, %s3585_s18  ;;  %s302_s14 = scalar_lea.vmem [#allocation2], %s3352_s15 }
  0x6a   : > { %s309_s16 = sshll.u32 %s302_s14, 4  ;;  %p4909_p7 = pnand %p4064_p11, %p4878_p8  ;;  %s4905_s16 = int_to_ptr.vmem [resolvable:$true] %s309_s16 }
  0x6b   : > { %s4913_s9 = scalar_lea.sflag [#allocation3], %s298_s28  ;;  %s4589_s12 = scalar_lea.hbm %s4903_s22, 256 }
  0x6c   : > { %p4590_p13 = scmp.ne.s32.totalorder %s4903_s22, %s4589_s12  ;;  %p4591_p2 = pneg %p4909_p7 }
  0x6d   : > { %s4594_s15 = scalar_lea.hbm %s5398_s0, 512  ;;  %p4595_p8 = scmp.lt.s32.totalorder %s4903_s22, %s5398_s0 }
  0x6e   : > { %p4592_p5 = pnand %p4591_p2, %p4590_p13  ;;  %p4596_p10 = scmp.lt.s32.totalorder %s4594_s15, %s4589_s12 }
  0x70   : > { %p4593_p9 = pneg %p4592_p5  ;;  %p4597_p11 = por %p4596_p10, %p4595_p8 }
  0x72   : > { %p4598_p4 = pnand %p4597_p11, %p4593_p9 }
  0x74   : > { %4601 = shalt.err (!%p4598_p4)
}
  0x75   : > { %s4602_s13 = scalar_lea.vmem %s4905_s16, 256  ;;  %s4707_s28 = smov [#allocation2]  }
  0x76   : > { %p4603_p1 = scmp.ne.s32.totalorder %s4905_s16, %s4602_s13  ;;  %s4607_s1 = sshll.u32 %s4707_s28, 4  ;;  %s4608_s1 = int_to_ptr.vmem [resolvable:$false] %s4607_s1 }
  0x77   : > { %s4609_s18 = scalar_lea.vmem %s4608_s1, 512  ;;  %p4610_p5 = scmp.lt.s32.totalorder %s4905_s16, %s4608_s1 }
  0x78   : > { %p4605_p0 = pnand %p4603_p1, %p4591_p2  ;;  %p4611_p12 = scmp.lt.s32.totalorder %s4609_s18, %s4602_s13 }
  0x7a   : > { %p4606_p13 = pneg %p4605_p0  ;;  %p4612_p6 = por %p4611_p12, %p4610_p5 }
  0x7c   : > { %p4613_p3 = pnand %p4612_p6, %p4606_p13 }
  0x7e   : > { %4616 = shalt.err (!%p4613_p3)
}
  0x7f   : > { %s5422_s12 = smov 8   ;;  %s5423_s19 = smov 128  }
  0x80   : > { %4053 = dma.hbm_to_vmem [thread:$0]  (!%p4909_p7), %s4903_s22, 256, %s4905_s16, %s4913_s9, %s5423_s19, %s5423_s19, %s5422_s12  }
  0x81   : > { %p5424_p1 = scmp.ne.s32.totalorder %s5413_s8, 0 }
  0x82   : > { %s4940_s15 = sand.u32 (!%p5424_p1), 1, %s4685_s25   ;;  %p5425_p3 = scmp.ne.s32.totalorder (!%p5424_p1), %s5418_s23, 0 }
  0x83   : > { %321 = sbr.rel (%p5424_p1) target bundleno = 3817 (0xee9), region = 48  ;;  %s3356_s1 = sshll.u32 (!%p5424_p1), %s4940_s15, 4 }
  0x84   : > { %s324_s20 = scalar_lea.sflag (!%p5424_p1), [#allocation3], %s4940_s15  ;;  %s4946_s17 = scalar_lea.vmem (!%p5424_p1), [#allocation2], %s3356_s1 }
  0x88   : > { %4660 = dma.done.wait (%p5425_p3), %s324_s20, 256  }
  0x89   : > { %4662 = vsyncadd (%p5425_p3), %s324_s20, 4294967040  ;;  %p5426_p4 = scmp.eq.s32.totalorder %s4775_s30, 0 }
  0x8b   : > { %4664 = dma.done.wait (%p5426_p4), [#allocation6], 3072   ;;  %p5427_p6 = pmov %p5426_p4 }
  0x8c   : > { %p5428_p12 = pmov %p5426_p4 }
  0x8d   : > { %4666 = vsyncadd (%p5427_p6), [#allocation6], 4294964224 }
  0x8e   : > { %4668 = dma.done.wait (%p5428_p12), [#allocation9], 24576   ;;  %p5429_p0 = pmov %p5426_p4 }
  0x90   : > { %4670 = vsyncadd (%p5429_p0), [#allocation9], 4294942720  ;;  %p5430_p7 = pmov %p5429_p0 }
  0x91   : > { %p5431_p2 = pmov %p5429_p0 }
  0x92   : > { %4672 = dma.done.wait (%p5430_p7), [#allocation12], 512  }
  0x93   : > { %4674 = vsyncadd (%p5431_p2), [#allocation12], 4294966784  ;;  %v4708_v0 = vmov 0.0   ;;  %vm4709_vm0 = vmmov 0   ;;  %v4121_v1 = vld [vmem:[#allocation5 + $0x38] sm:$0xff]   ;;  %v4122_v2 = vld [vmem:[#allocation5 + $0x30] sm:$0xff]   ;;  %v440_v28 = vlaneseq }
  0x94   : > { %3883 = vmatprep.subr.bf16.mxu0 %v4708_v0  ;;  %3899 = vmatprep.mubr.msk.bf16.mxu0 %vm4709_vm0, %v4708_v0  ;;  %v4123_v3 = vld [vmem:[#allocation5 + $0x28] sm:$0xff]   ;;  %v4124_v4 = vld [vmem:[#allocation5 + $0x20] sm:$0xff]   ;;  %v4129_v5 = vld [vmem:[#allocation7 + $0x78] sm:$0xff]   ;;  %s3586_s8 = sshll.u32 %s4775_s30, 8  ;;  %s381_s9 = scalar_lea.vmem [#allocation14], %s3356_s1 }
  0x95   : > { %3884 = vmatpush3.bf16.msra.mxu0 %v4121_v1  ;;  %v4130_v6 = vld [vmem:[#allocation7 + $0x38] sm:$0xff]   ;;  %3596 = vmatprep.subr.bf16.mxu1 %v4129_v5  ;;  %v4131_v7 = vld [vmem:[#allocation7 + $0x70] sm:$0xff]   ;;  %v4133_v9 = vld [vmem:[#allocation7 + $0x68] sm:$0xff]   ;;  %v5014_v29 = vshrl.u32 %v440_v28, 7  ;;  %s3213_s23 = sshll.u32 %s381_s9, 4  ;;  %s5353_s14 = scalar_lea.hbm %s5405_s7, %s3586_s8  ;;  %s5355_s23 = int_to_ptr.vmem [resolvable:$true] %s3213_s23 }
  0x96   : > { %3885 = vmatprep.subr.bf16.mxu0 %v4708_v0  ;;  %3597 = vmatpush3.bf16.msra.mxu1 %v4130_v6  ;;  %v4132_v8 = vld [vmem:[#allocation7 + $0x30] sm:$0xff]   ;;  %v4125_v10 = vld [vmem:[#allocation5 + $0x18] sm:$0xff]   ;;  %v4134_v12 = vld [vmem:[#allocation7 + $0x28] sm:$0xff]   ;;  %s3200_s13 = scalar_lea.sflag [#allocation4], %s4940_s15  ;;  %s4617_s28 = scalar_lea.vmem %s5355_s23, 256 }
  0x97   : > { %3598 = vmatprep.subr.bf16.mxu1 %v4131_v7  ;;  %v4126_v11 = vld [vmem:[#allocation5 + $0x10] sm:$0xff]   ;;  %v4135_v13 = vld [vmem:[#allocation7 + $0x60] sm:$0xff]   ;;  %v4127_v15 = vld [vmem:[#allocation5 + $0x8] sm:$0xff]   ;;  %v5017_v30 = vsub.s32 0, %v5014_v29  ;;  %p4618_p9 = scmp.ne.s32.totalorder %s5355_s23, %s4617_s28  ;;  %p5432_p8 = scmp.ne.s32.totalorder %s5419_s29, 0 }
  0x98   : > { %v4136_v14 = vld [vmem:[#allocation7 + $0x20] sm:$0xff]   ;;  %v386_v18 = vld [vmem:[%s4946_s17 + $0x8] sm:$0xff]  ;;  %v4990_v22 = vld [vmem:[#allocation7 + $0x50] sm:$0xff]   ;;  %s4711_s30 = smov [#allocation14]  }
  0x99   : > { %3886 = vmatpush3.bf16.msra.mxu0 %v4122_v2  ;;  %v4128_v16 = vld [vmem:[#allocation5] sm:$0xff]   ;;  %v4983_v20 = vld [vmem:[#allocation7 + $0x58] sm:$0xff]   ;;  %v4993_v23 = vld [vmem:[#allocation7 + $0x10] sm:$0xff]   ;;  %p4619_p10 = pnand %p4618_p9, %p5432_p8  ;;  %s4621_s18 = sshll.u32 %s4711_s30, 4  ;;  %s4622_s18 = int_to_ptr.vmem [resolvable:$false] %s4621_s18 }
  0x9a   : > { %3887 = vmatprep.subr.bf16.mxu0 %v4708_v0  ;;  %3599 = vmatpush3.bf16.msra.mxu1 %v4132_v8  ;;  %v385_v17 = vld [vmem:[%s4946_s17] sm:$0xff]  ;;  %v4985_v21 = vld [vmem:[#allocation7 + $0x18] sm:$0xff]   ;;  %v4998_v24 = vld [vmem:[#allocation7 + $0x48] sm:$0xff]   ;;  %s4623_s12 = scalar_lea.vmem %s4622_s18, 512  ;;  %p4624_p13 = scmp.lt.s32.totalorder %s5355_s23, %s4622_s18 }
  0x9b   : > { %3600 = vmatprep.subr.bf16.mxu1 %v4133_v9  ;;  %v439_v19 = vpack.c.bf16 %v386_v18, %v385_v17  ;;  %v5001_v25 = vld [vmem:[#allocation7 + $0x8] sm:$0xff]   ;;  %v5003_v26 = vld [vmem:[#allocation7 + $0x40] sm:$0xff]   ;;  %p4620_p11 = pneg %p4619_p10  ;;  %p4625_p5 = scmp.lt.s32.totalorder %s4623_s12, %s4617_s28 }
  0x9c   : > { %v5005_v27 = vld [vmem:[#allocation7] sm:$0xff]   ;;  %v4150_v49 = vld [vmem:[#allocation8 + $0xec] ss:$16 sps:$4 sm:$0xff]   ;;  %v4148_v60 = vld [vmem:[#allocation8 + $0xe8] ss:$16 sps:$4 sm:$0xff]  }
  0x9d   : > { %3888 = vmatpush3.bf16.msra.mxu0 %v4123_v3  ;;  %v5019_v31 = vld [vmem:[#allocation11] sm:$0xff]  ;;  %v4156_v63 = vld [vmem:[#allocation8 + $0xcc] ss:$16 sps:$4 sm:$0xff]   ;;  %v4154_v2 = vld [vmem:[#allocation8 + $0xc8] ss:$16 sps:$4 sm:$0xff]   ;;  %p4626_p1 = por %p4625_p5, %p4624_p13 }
  0x9e   : > { %3889 = vmatprep.subr.bf16.mxu0 %v4708_v0  ;;  %3601 = vmatpush3.bf16.msra.mxu1 %v4134_v12  ;;  %v443_v32 = vrot.slane %v5019_v31, %v5017_v30  ;;  %v4145_v47 = vld [vmem:[#allocation8 + $0xe0] ss:$16 sps:$4 sm:$0xff]   ;;  %v4147_v48 = vld [vmem:[#allocation8 + $0xe4] ss:$16 sps:$4 sm:$0xff]   ;;  %v4186_v28 = vld [vmem:[#allocation8 + $0x2c] ss:$16 sps:$4 sm:$0xff]  }
  0x9f   : > { %3602 = vmatprep.subr.bf16.mxu1 %v4135_v13  ;;  %v4153_v62 = vld [vmem:[#allocation8 + $0xc4] ss:$16 sps:$4 sm:$0xff]   ;;  %v4151_v1 = vld [vmem:[#allocation8 + $0xc0] ss:$16 sps:$4 sm:$0xff]   ;;  %p4627_p3 = pnand %p4626_p1, %p4620_p11 }
  0xa0   : > { %v4159_v3 = vld [vmem:[#allocation8 + $0xa4] ss:$16 sps:$4 sm:$0xff]   ;;  %v4157_v5 = vld [vmem:[#allocation8 + $0xa0] ss:$16 sps:$4 sm:$0xff]  }
  0xa1   : > { %3890 = vmatpush3.bf16.msra.mxu0 %v4124_v4  ;;  %v4162_v4 = vld [vmem:[#allocation8 + $0xac] ss:$16 sps:$4 sm:$0xff]   ;;  %v4165_v7 = vld [vmem:[#allocation8 + $0x84] ss:$16 sps:$4 sm:$0xff]   ;;  %v4163_v9 = vld [vmem:[#allocation8 + $0x80] ss:$16 sps:$4 sm:$0xff]  }
  0xa2   : > { %3891 = vmatprep.subr.bf16.mxu0 %v4708_v0  ;;  %3603 = vmatpush3.bf16.msra.mxu1 %v4136_v14  ;;  %v4169_v13 = vld [vmem:[#allocation8 + $0x60] ss:$16 sps:$4 sm:$0xff]  }
  0xa3   : > { %3604 = vmatprep.subr.bf16.mxu1 %v4983_v20 }
  0xa5   : > { %3892 = vmatpush3.bf16.msra.mxu0 %v4125_v10  ;;  %v4166_v10 = vld [vmem:[#allocation8 + $0x88] ss:$16 sps:$4 sm:$0xff]  }
  0xa6   : > { %3893 = vmatprep.subr.bf16.mxu0 %v4708_v0  ;;  %3605 = vmatpush3.bf16.msra.mxu1 %v4985_v21 }
  0xa7   : > { %3606 = vmatprep.subr.bf16.mxu1 %v4990_v22 }
  0xa9   : > { %3894 = vmatpush3.bf16.msra.mxu0 %v4126_v11  ;;  %v4171_v11 = vld [vmem:[#allocation8 + $0x64] ss:$16 sps:$4 sm:$0xff]  }
  0xaa   : > { %3895 = vmatprep.subr.bf16.mxu0 %v4708_v0  ;;  %3607 = vmatpush3.bf16.msra.mxu1 %v4993_v23 }
  0xab   : > { %3608 = vmatprep.subr.bf16.mxu1 %v4998_v24 }
  0xad   : > { %3896 = vmatpush3.bf16.msra.mxu0 %v4127_v15  ;;  %v4177_v15 = vld [vmem:[#allocation8 + $0x44] ss:$16 sps:$4 sm:$0xff]  }
  0xae   : > { %3897 = vmatprep.subr.bf16.mxu0 %v4708_v0  ;;  %3609 = vmatpush3.bf16.msra.mxu1 %v5001_v25 }
  0xaf   : > { %3610 = vmatprep.subr.bf16.mxu1 %v5003_v26 }
  0xb1   : > { %3898 = vmatpush3.bf16.msra.mxu0 %v4128_v16  ;;  %v4180_v16 = vld [vmem:[#allocation8 + $0x4c] ss:$16 sps:$4 sm:$0xff]  }
  0xb2   : > { %3903 = vmatprep.subr.bf16.mxu0 %v4708_v0  ;;  %3611 = vmatpush3.bf16.msra.mxu1 %v5005_v27 }
  0xb3   : > { %971 = vmatprep.subr.bf16.mxu1 %v4147_v48 }
  0xb4   : > { %3900 = vmatmul.mubr.bf16.vlgmr.msra.gmra.mxu0 %v439_v19  ;;  %v4183_v19 = vld [vmem:[#allocation8 + $0x24] ss:$16 sps:$4 sm:$0xff]  }
  0xb5   : > { %3904 = vmatpush3.bf16.msra.mxu0 %v4130_v6  ;;  %3919 = vmatprep.mubr.msk.bf16.mxu0 %vm4709_vm0, %v4708_v0  ;;  %v4160_v6 = vld [vmem:[#allocation8 + $0xa8] ss:$16 sps:$4 sm:$0xff]  }
  0xb6   : > { %3905 = vmatprep.subr.bf16.mxu0 %v4708_v0 }
  0xb9   : > { %3906 = vmatpush3.bf16.msra.mxu0 %v4132_v8  ;;  %v4168_v8 = vld [vmem:[#allocation8 + $0x8c] ss:$16 sps:$4 sm:$0xff]  }
  0xba   : > { %3907 = vmatprep.subr.bf16.mxu0 %v4708_v0 }
  0xbd   : > { %3908 = vmatpush3.bf16.msra.mxu0 %v4134_v12  ;;  %v4174_v12 = vld [vmem:[#allocation8 + $0x6c] ss:$16 sps:$4 sm:$0xff]  }
  0xbe   : > { %3909 = vmatprep.subr.bf16.mxu0 %v4708_v0 }
  0xc1   : > { %3910 = vmatpush3.bf16.msra.mxu0 %v4136_v14  ;;  %v4172_v14 = vld [vmem:[#allocation8 + $0x68] ss:$16 sps:$4 sm:$0xff]  }
  0xc2   : > { %3911 = vmatprep.subr.bf16.mxu0 %v4708_v0 }
  0xc5   : > { %3912 = vmatpush3.bf16.msra.mxu0 %v4985_v21 }
  0xc6   : > { %3913 = vmatprep.subr.bf16.mxu0 %v4708_v0 }
  0xc9   : > { %3914 = vmatpush3.bf16.msra.mxu0 %v4993_v23 }
  0xca   : > { %3915 = vmatprep.subr.bf16.mxu0 %v4708_v0 }
  0xcd   : > { %3916 = vmatpush3.bf16.msra.mxu0 %v5001_v25 }
  0xce   : > { %3917 = vmatprep.subr.bf16.mxu0 %v4708_v0 }
  0xd1   : > { %3918 = vmatpush3.bf16.msra.mxu0 %v5005_v27 }
  0xd2   : > { %1014 = vmatprep.subr.bf16.mxu0 %v4150_v49 }
 0x174   : > { %v526_v33 = vpop.f32.mrf.mxu0 }
 0x175   : > { %v527_v35 = vadd.f32 %v526_v33, %v443_v32  ;;  %v4184_v33 = vld [vmem:[#allocation8 + $0x28] ss:$16 sps:$4 sm:$0xff]  }
 0x176   : > { %v3901_v34 = vpop.f32.mrf.mxu0 }
 0x177   : > { %v533_v39 = vadd.f32 %v527_v35, %v385_v17  ;;  %v4175_v17 = vld [vmem:[#allocation8 + $0x40] ss:$16 sps:$4 sm:$0xff]   ;;  %v4189_v35 = vld [vmem:[#allocation8 + $0x4] ss:$16 sps:$4 sm:$0xff]  }
 0x178   : > { %v529_v36 = vpop.f32.mrf.mxu0  ;;  %v4187_v34 = vld [vmem:[#allocation8] ss:$16 sps:$4 sm:$0xff]  }
 0x179   : > { %v530_v37 = vadd.f32 %v529_v36, %v443_v32  ;;  %v4181_v32 = vld [vmem:[#allocation8 + $0x20] ss:$16 sps:$4 sm:$0xff]   ;;  %v4190_v36 = vld [vmem:[#allocation8 + $0x8] ss:$16 sps:$4 sm:$0xff]  }
 0x17a   : > { %v3902_v38 = vpop.f32.mrf.mxu0 }
 0x17b   : > { %v534_v40 = vadd.f32 %v530_v37, %v386_v18  ;;  %v4178_v18 = vld [vmem:[#allocation8 + $0x48] ss:$16 sps:$4 sm:$0xff]   ;;  %v4192_v37 = vld [vmem:[#allocation8 + $0xc] ss:$16 sps:$4 sm:$0xff]   ;;  %v4710_v38 = vmov 0  }
 0x17d   : > { %v535_v41 = vpack.c.bf16 %v534_v40, %v533_v39 }
 0x17f   : > { %v536_v42 = vunpack.c.l.bf16 %v535_v41  ;;  %v537_v43 = vunpack.c.h.bf16 %v535_v41 }
 0x181   : > { %v538_v44 = vsub.f32 %v533_v39, %v536_v42  ;;  %v539_v45 = vsub.f32 %v534_v40, %v537_v43 }
 0x183   : > { %v540_v46 = vpack.c.bf16 %v539_v45, %v538_v44 }
 0x185   : > { %669 = vmatprep.mubr.bf16.mxu1 %v540_v46 }
 0x186   : > { %670 = vmatmul.mubr.bf16.vlgmr.msra.gmra.mxu1 %v535_v41 }
 0x187   : > { %972 = vmatpush1.bf16.msra.mxu1 %v4145_v47  ;;  %1003 = vmatprep.mubr.bf16.mxu1 %v4710_v38  ;;  %v5034_v47 = vsub.s32 1, %v5014_v29 }
 0x188   : > { %973 = vmatprep.subr.bf16.mxu1 %v4153_v62 }
 0x18b   : > { %974 = vmatpush1.bf16.msra.mxu1 %v4151_v1  ;;  %v4198_v1 = vld [vmem:[#allocation10 + $0xf0] sm:$0xff]  }
 0x18c   : > { %975 = vmatprep.subr.bf16.mxu1 %v4159_v3  ;;  %v4201_v3 = vld [vmem:[#allocation10 + $0x68] sm:$0xff]  }
 0x18f   : > { %976 = vmatpush1.bf16.msra.mxu1 %v4157_v5  ;;  %v4203_v5 = vld [vmem:[#allocation10 + $0x28] sm:$0xff]  }
 0x190   : > { %977 = vmatprep.subr.bf16.mxu1 %v4165_v7  ;;  %v4205_v7 = vld [vmem:[#allocation10 + $0x60] sm:$0xff]  }
 0x193   : > { %978 = vmatpush1.bf16.msra.mxu1 %v4163_v9  ;;  %v4207_v9 = vld [vmem:[#allocation10 + $0x20] sm:$0xff]  }
 0x194   : > { %979 = vmatprep.subr.bf16.mxu1 %v4171_v11  ;;  %v4209_v11 = vld [vmem:[#allocation10 + $0x58] sm:$0xff]  }
 0x197   : > { %980 = vmatpush1.bf16.msra.mxu1 %v4169_v13  ;;  %v4211_v13 = vld [vmem:[#allocation10 + $0x18] sm:$0xff]  }
 0x198   : > { %981 = vmatprep.subr.bf16.mxu1 %v4177_v15  ;;  %v4213_v15 = vld [vmem:[#allocation10 + $0x50] sm:$0xff]  }
 0x19b   : > { %982 = vmatpush1.bf16.msra.mxu1 %v4175_v17  ;;  %v4215_v17 = vld [vmem:[#allocation10 + $0x10] sm:$0xff]  }
 0x19c   : > { %983 = vmatprep.subr.bf16.mxu1 %v4183_v19  ;;  %v4217_v19 = vld [vmem:[#allocation10 + $0x48] sm:$0xff]  }
 0x19f   : > { %984 = vmatpush1.bf16.msra.mxu1 %v4181_v32  ;;  %v4219_v32 = vld [vmem:[#allocation10 + $0x8] sm:$0xff]  }
 0x1a0   : > { %985 = vmatprep.subr.bf16.mxu1 %v4189_v35  ;;  %v4222_v35 = vld [vmem:[#allocation10 + $0xc0] sm:$0xff]  }
 0x1a3   : > { %986 = vmatpush1.bf16.msra.mxu1 %v4187_v34  ;;  %v4221_v34 = vld [vmem:[#allocation10 + $0x40] sm:$0xff]  }
 0x246   : > { %v3612_v50 = vpop.f32.mrf.mxu1 }
 0x248   : > { %v3613_v51 = vpop.f32.mrf.mxu1 }
 0x249   : > { %v3614_v52 = vadd.f32 %v3613_v51, %v3612_v50  ;;  %v731_v50 = vrot.slane %v5019_v31, %v5034_v47  ;;  %v5040_v51 = vsub.s32 2, %v5014_v29 }
 0x24a   : > { %v3615_v53 = vpop.f32.mrf.mxu1 }
 0x24b   : > { %v5023_v55 = vsub.f32 %v533_v39, %v3614_v52  ;;  %v4193_v39 = vld [vmem:[#allocation10 + $0x78] sm:$0xff]  }
 0x24c   : > { %v3616_v54 = vpop.f32.mrf.mxu1  ;;  %3627 = vmatprep.subr.bf16.mxu1 %v4193_v39  ;;  %v5051_v39 = vld [vmem:[#allocation7 + $0x78] sm:$0xff]  }
 0x24d   : > { %v3617_v56 = vadd.f32 %v3616_v54, %v3615_v53  ;;  %v680_v58 = vmul.f32 %v5023_v55, %v5023_v55 }
 0x24f   : > { %v5025_v57 = vsub.f32 %v534_v40, %v3617_v56  ;;  %v4194_v40 = vld [vmem:[#allocation10 + $0xf8] sm:$0xff]   ;;  %v737_v56 = vrot.slane %v5019_v31, %v5040_v51 }
 0x251   : > { %v681_v59 = vmul.f32 %v5025_v57, %v5025_v57 }
 0x253   : > { %v682_v61 = vpack.c.bf16 %v681_v59, %v680_v58 }
 0x255   : > { %3920 = vmatmul.mubr.bf16.vlgmr.msra.gmra.mxu0 %v682_v61  ;;  %v4195_v61 = vld [vmem:[#allocation10 + $0x38] sm:$0xff]  }
 0x256   : > { %1015 = vmatpush1.bf16.msra.mxu0 %v4148_v60  ;;  %1046 = vmatprep.mubr.bf16.mxu0 %v4710_v38 }
 0x257   : > { %1016 = vmatprep.subr.bf16.mxu0 %v4156_v63  ;;  %v4197_v63 = vld [vmem:[#allocation10 + $0x70] sm:$0xff]  }
 0x25a   : > { %1017 = vmatpush1.bf16.msra.mxu0 %v4154_v2  ;;  %v4200_v2 = vld [vmem:[#allocation10 + $0xb0] sm:$0xff]  }
 0x25b   : > { %1018 = vmatprep.subr.bf16.mxu0 %v4162_v4  ;;  %v4202_v4 = vld [vmem:[#allocation10 + $0xe8] sm:$0xff]  }
 0x25e   : > { %1019 = vmatpush1.bf16.msra.mxu0 %v4160_v6  ;;  %v4204_v6 = vld [vmem:[#allocation10 + $0xa8] sm:$0xff]  }
 0x25f   : > { %1020 = vmatprep.subr.bf16.mxu0 %v4168_v8  ;;  %v4206_v8 = vld [vmem:[#allocation10 + $0xe0] sm:$0xff]  }
 0x262   : > { %1021 = vmatpush1.bf16.msra.mxu0 %v4166_v10  ;;  %v4208_v10 = vld [vmem:[#allocation10 + $0xa0] sm:$0xff]  }
 0x263   : > { %1022 = vmatprep.subr.bf16.mxu0 %v4174_v12  ;;  %v4210_v12 = vld [vmem:[#allocation10 + $0xd8] sm:$0xff]  }
 0x266   : > { %1023 = vmatpush1.bf16.msra.mxu0 %v4172_v14  ;;  %v4212_v14 = vld [vmem:[#allocation10 + $0x98] sm:$0xff]  }
 0x267   : > { %1024 = vmatprep.subr.bf16.mxu0 %v4180_v16  ;;  %v4214_v16 = vld [vmem:[#allocation10 + $0xd0] sm:$0xff]  }
 0x26a   : > { %1025 = vmatpush1.bf16.msra.mxu0 %v4178_v18  ;;  %v4216_v18 = vld [vmem:[#allocation10 + $0x90] sm:$0xff]  }
 0x26b   : > { %1026 = vmatprep.subr.bf16.mxu0 %v4186_v28  ;;  %v4218_v28 = vld [vmem:[#allocation10 + $0xc8] sm:$0xff]  }
 0x26e   : > { %1027 = vmatpush1.bf16.msra.mxu0 %v4184_v33  ;;  %v4220_v33 = vld [vmem:[#allocation10 + $0x88] sm:$0xff]  }
 0x26f   : > { %1028 = vmatprep.subr.bf16.mxu0 %v4192_v37  ;;  %v4224_v37 = vld [vmem:[#allocation10 + $0x80] sm:$0xff]  }
 0x272   : > { %1029 = vmatpush1.bf16.msra.mxu0 %v4190_v36  ;;  %v4223_v36 = vld [vmem:[#allocation10] sm:$0xff]  }
 0x273   : > { %3649 = vmatprep.subr.bf16.mxu0 %v4194_v40  ;;  %v5056_v40 = vsub.s32 4, %v5014_v29 }
 0x315   : > { %v717_v41 = vpop.f32.mrf.mxu0 }
 0x316   : > { %v718_v42 = vadd.f32 1e-05, %v717_v41  ;;  %v5058_v41 = vld [vmem:[#allocation13] sm:$0x77] }
 0x317   : > { %v3921_v43 = vpop.f32.mrf.mxu0 }
 0x318   : > { %4385 = vrsqrt.f32 %v718_v42  ;;  %v5060_v42 = vld [vmem:[#allocation13 + $0x8] sm:$0x77]  ;;  %v782_v43 = vrot.slane %v5058_v41, %v5056_v40 }
 0x319   : > { %v720_v44 = vpop.f32.mrf.mxu0 }
 0x31a   : > { %v721_v45 = vadd.f32 1e-05, %v720_v44  ;;  %v790_v44 = vrot.slane %v5060_v42, %v5056_v40 }
 0x31b   : > { %v3922_v46 = vpop.f32.mrf.mxu0 }
 0x31c   : > { %4387 = vrsqrt.f32 %v721_v45  ;;  %v778_v45 = vrot.slane %v5058_v41, %v5017_v30  ;;  %v786_v46 = vrot.slane %v5060_v42, %v5017_v30 }
 0x325   : > { %v4386_v48 = vpop.eup %4385 }
 0x326   : > { %v726_v49 = vmul.f32 %v4386_v48, %v5023_v55  ;;  %v4196_v55 = vld [vmem:[#allocation10 + $0xb8] sm:$0xff]  }
 0x328   : > { %v732_v54 = vmul.f32 %v731_v50, %v726_v49 }
 0x329   : > { %v4388_v52 = vpop.eup %4387 }
 0x32a   : > { %v727_v53 = vmul.f32 %v4388_v52, %v5025_v57  ;;  %v5045_v59 = vadd.f32 %v737_v56, %v732_v54  ;;  %v4199_v57 = vld [vmem:[#allocation10 + $0x30] sm:$0xff]   ;;  %v810_v52 = vrot.slane %v790_v44, %v5017_v30  ;;  %v806_v54 = vrot.slane %v786_v46, %v5017_v30 }
 0x32c   : > { %v733_v58 = vmul.f32 %v731_v50, %v727_v53  ;;  %v802_v50 = vrot.slane %v782_v43, %v5017_v30  ;;  %v798_v53 = vrot.slane %v778_v45, %v5017_v30 }
 0x32e   : > { %v5047_v60 = vadd.f32 %v737_v56, %v733_v58 }
 0x330   : > { %v740_v62 = vpack.c.bf16 %v5047_v60, %v5045_v59 }
 0x332   : > { %1004 = vmatmul.mubr.bf16.vlgmr.msra.gmra.mxu1 %v740_v62  ;;  %1047 = vmatmul.mubr.bf16.vlgmr.msra.gmra.mxu0 %v740_v62 }
 0x333   : > { %3628 = vmatpush3.bf16.msra.mxu1 %v4195_v61  ;;  %3650 = vmatpush3.bf16.msra.mxu0 %v4196_v55 }
 0x334   : > { %3629 = vmatprep.subr.bf16.mxu1 %v4197_v63  ;;  %3651 = vmatprep.subr.bf16.mxu0 %v4198_v1 }
 0x337   : > { %3630 = vmatpush3.bf16.msra.mxu1 %v4199_v57  ;;  %3652 = vmatpush3.bf16.msra.mxu0 %v4200_v2 }
 0x338   : > { %3631 = vmatprep.subr.bf16.mxu1 %v4201_v3  ;;  %3653 = vmatprep.subr.bf16.mxu0 %v4202_v4 }
 0x33b   : > { %3632 = vmatpush3.bf16.msra.mxu1 %v4203_v5  ;;  %3654 = vmatpush3.bf16.msra.mxu0 %v4204_v6 }
 0x33c   : > { %3633 = vmatprep.subr.bf16.mxu1 %v4205_v7  ;;  %3655 = vmatprep.subr.bf16.mxu0 %v4206_v8 }
 0x33f   : > { %3634 = vmatpush3.bf16.msra.mxu1 %v4207_v9  ;;  %3656 = vmatpush3.bf16.msra.mxu0 %v4208_v10 }
 0x340   : > { %3635 = vmatprep.subr.bf16.mxu1 %v4209_v11  ;;  %3657 = vmatprep.subr.bf16.mxu0 %v4210_v12 }
 0x343   : > { %3636 = vmatpush3.bf16.msra.mxu1 %v4211_v13  ;;  %3658 = vmatpush3.bf16.msra.mxu0 %v4212_v14 }
 0x344   : > { %3637 = vmatprep.subr.bf16.mxu1 %v4213_v15  ;;  %3659 = vmatprep.subr.bf16.mxu0 %v4214_v16 }
 0x347   : > { %3638 = vmatpush3.bf16.msra.mxu1 %v4215_v17  ;;  %3660 = vmatpush3.bf16.msra.mxu0 %v4216_v18 }
 0x348   : > { %3639 = vmatprep.subr.bf16.mxu1 %v4217_v19  ;;  %3661 = vmatprep.subr.bf16.mxu0 %v4218_v28  ;;  %v5074_v28 = vld [vmem:[#allocation7 + $0x38] sm:$0xff]  }
 0x34b   : > { %3640 = vmatpush3.bf16.msra.mxu1 %v4219_v32  ;;  %3662 = vmatpush3.bf16.msra.mxu0 %v4220_v33  ;;  %v5078_v32 = vld [vmem:[#allocation7 + $0x70] sm:$0xff]  }
 0x34c   : > { %3641 = vmatprep.subr.bf16.mxu1 %v4221_v34  ;;  %3663 = vmatprep.subr.bf16.mxu0 %v4222_v35  ;;  %v5084_v33 = vld [vmem:[#allocation7 + $0x30] sm:$0xff]   ;;  %v5088_v34 = vld [vmem:[#allocation7 + $0x68] sm:$0xff]  }
 0x34d   : > { %v5092_v35 = vld [vmem:[#allocation7 + $0x28] sm:$0xff]  }
 0x34f   : > { %3642 = vmatpush3.bf16.msra.mxu1 %v4223_v36  ;;  %3664 = vmatpush3.bf16.msra.mxu0 %v4224_v37  ;;  %v5096_v36 = vld [vmem:[#allocation7 + $0x60] sm:$0xff]  }
 0x350   : > { %3671 = vmatprep.subr.bf16.mxu1 %v5051_v39  ;;  %3923 = vmatprep.subr.bf16.mxu0 %v4708_v0  ;;  %v5100_v37 = vld [vmem:[#allocation7 + $0x20] sm:$0xff]  }
 0x3f2   : > { %v1005_v48 = vpop.f32.mrf.mxu1  ;;  %v1048_v49 = vpop.f32.mrf.mxu0 }
 0x3f3   : > { %v1006_v2 = vadd.f32 %v1005_v48, %v798_v53  ;;  %v1049_v3 = vadd.f32 %v1048_v49, %v806_v54 }
 0x3f4   : > { %v1007_v56 = vpop.f32.mrf.mxu1  ;;  %v1050_v58 = vpop.f32.mrf.mxu0 }
 0x3f5   : > { %v1008_v62 = vadd.f32 %v1007_v56, %v802_v50  ;;  %v1051_v63 = vadd.f32 %v1050_v58, %v810_v52  ;;  %v1057_v14 = vmax.f32 %v1006_v2, 0.0  ;;  %v1059_v15 = vmax.f32 %v1049_v3, 0.0  ;;  %v4225_v3 = vld [vmem:[#allocation8 + $0x1e0] ss:$16 sps:$4 sm:$0xff]  }
 0x3f6   : > { %v1009_v61 = vpop.f32.mrf.mxu1  ;;  %v1052_v55 = vpop.f32.mrf.mxu0 }
 0x3f7   : > { %v1010_v1 = vadd.f32 %v1009_v61, %v798_v53  ;;  %v1053_v57 = vadd.f32 %v1052_v55, %v806_v54  ;;  %v1058_v10 = vmax.f32 %v1008_v62, 0.0  ;;  %v1060_v11 = vmax.f32 %v1051_v63, 0.0 }
 0x3f8   : > { %v1011_v4 = vpop.f32.mrf.mxu1  ;;  %v1054_v5 = vpop.f32.mrf.mxu0 }
 0x3f9   : > { %v1012_v6 = vadd.f32 %v1011_v4, %v802_v50  ;;  %v1055_v7 = vadd.f32 %v1054_v5, %v810_v52  ;;  %v1061_v8 = vmax.f32 %v1010_v1, 0.0  ;;  %v1063_v9 = vmax.f32 %v1053_v57, 0.0  ;;  %v4227_v4 = vld [vmem:[#allocation8 + $0x1e4] ss:$16 sps:$4 sm:$0xff]   ;;  %v4230_v5 = vld [vmem:[#allocation8 + $0x1ec] ss:$16 sps:$4 sm:$0xff]  }
 0x3fb   : > { %v1062_v12 = vmax.f32 %v1012_v6, 0.0  ;;  %v1064_v13 = vmax.f32 %v1055_v7, 0.0  ;;  %v1065_v18 = vpack.c.bf16 %v1061_v8, %v1057_v14  ;;  %v1067_v19 = vpack.c.bf16 %v1063_v9, %v1059_v15 }
 0x3fd   : > { %v1066_v16 = vpack.c.bf16 %v1062_v12, %v1058_v10  ;;  %v1068_v17 = vpack.c.bf16 %v1064_v13, %v1060_v11 }
 0x3ff   : > { %1361 = vmatprep.mubr.bf16.mxu1 %v1066_v16  ;;  %1402 = vmatprep.mubr.bf16.mxu0 %v1068_v17  ;;  %v4228_v16 = vld [vmem:[#allocation8 + $0x1e8] ss:$16 sps:$4 sm:$0xff]  }
 0x400   : > { %1362 = vmatmul.mubr.bf16.vlgmr.msra.gmra.mxu1 %v1065_v18  ;;  %1403 = vmatmul.mubr.bf16.vlgmr.msra.gmra.mxu0 %v1067_v19  ;;  %v4233_v18 = vld [vmem:[#allocation8 + $0x1c4] ss:$16 sps:$4 sm:$0xff]   ;;  %v4236_v19 = vld [vmem:[#allocation8 + $0x1cc] ss:$16 sps:$4 sm:$0xff]  }
 0x401   : > { %3672 = vmatpush3.bf16.msra.mxu1 %v5074_v28  ;;  %3924 = vmatpush3.bf16.msra.mxu0 %v5074_v28 }
 0x402   : > { %3673 = vmatprep.subr.bf16.mxu1 %v5078_v32  ;;  %3925 = vmatprep.subr.bf16.mxu0 %v4708_v0 }
 0x403   : > { %3939 = vmatprep.mubr.msk.bf16.mxu0 %vm4709_vm0, %v4708_v0 }
 0x405   : > { %3674 = vmatpush3.bf16.msra.mxu1 %v5084_v33  ;;  %3926 = vmatpush3.bf16.msra.mxu0 %v5084_v33 }
 0x406   : > { %3675 = vmatprep.subr.bf16.mxu1 %v5088_v34  ;;  %3927 = vmatprep.subr.bf16.mxu0 %v4708_v0 }
 0x409   : > { %3676 = vmatpush3.bf16.msra.mxu1 %v5092_v35  ;;  %3928 = vmatpush3.bf16.msra.mxu0 %v5092_v35 }
 0x40a   : > { %3677 = vmatprep.subr.bf16.mxu1 %v5096_v36  ;;  %3929 = vmatprep.subr.bf16.mxu0 %v4708_v0 }
 0x40d   : > { %3678 = vmatpush3.bf16.msra.mxu1 %v5100_v37  ;;  %3930 = vmatpush3.bf16.msra.mxu0 %v5100_v37 }
 0x40e   : > { %3679 = vmatprep.subr.bf16.mxu1 %v4983_v20  ;;  %3931 = vmatprep.subr.bf16.mxu0 %v4708_v0  ;;  %v1135_v20 = vsub.s32 3, %v5014_v29 }
 0x411   : > { %3680 = vmatpush3.bf16.msra.mxu1 %v4985_v21  ;;  %3932 = vmatpush3.bf16.msra.mxu0 %v4985_v21  ;;  %v5121_v21 = vld [vmem:[#allocation11 + $0x8] sm:$0xff] }
 0x412   : > { %3681 = vmatprep.subr.bf16.mxu1 %v4990_v22  ;;  %3933 = vmatprep.subr.bf16.mxu0 %v4708_v0 }
 0x415   : > { %3682 = vmatpush3.bf16.msra.mxu1 %v4993_v23  ;;  %3934 = vmatpush3.bf16.msra.mxu0 %v4993_v23 }
 0x416   : > { %3683 = vmatprep.subr.bf16.mxu1 %v4998_v24  ;;  %3935 = vmatprep.subr.bf16.mxu0 %v4708_v0  ;;  %v1136_v24 = vrot.slane %v5121_v21, %v1135_v20 }
 0x419   : > { %3684 = vmatpush3.bf16.msra.mxu1 %v5001_v25  ;;  %3936 = vmatpush3.bf16.msra.mxu0 %v5001_v25 }
 0x41a   : > { %3685 = vmatprep.subr.bf16.mxu1 %v5003_v26  ;;  %3937 = vmatprep.subr.bf16.mxu0 %v4708_v0 }
 0x41d   : > { %3686 = vmatpush3.bf16.msra.mxu1 %v5005_v27  ;;  %3938 = vmatpush3.bf16.msra.mxu0 %v5005_v27 }
 0x41e   : > { %1752 = vmatprep.subr.bf16.mxu1 %v4227_v4  ;;  %1795 = vmatprep.subr.bf16.mxu0 %v4230_v5  ;;  %v4273_v4 = vld [vmem:[#allocation10 + $0x178] sm:$0xff]  }
 0x41f   : > { %v4274_v5 = vld [vmem:[#allocation10 + $0x1f8] sm:$0xff]  }
 0x4c0   : > { %v3643_v22 = vpop.f32.mrf.mxu1  ;;  %v3665_v23 = vpop.f32.mrf.mxu0 }
 0x4c2   : > { %v3644_v43 = vpop.f32.mrf.mxu1  ;;  %v3666_v25 = vpop.f32.mrf.mxu0 }
 0x4c3   : > { %v3645_v44 = vadd.f32 %v3644_v43, %v3643_v22  ;;  %v3667_v50 = vadd.f32 %v3666_v25, %v3665_v23  ;;  %v4231_v22 = vld [vmem:[#allocation8 + $0x1c0] ss:$16 sps:$4 sm:$0xff]   ;;  %v4234_v23 = vld [vmem:[#allocation8 + $0x1c8] ss:$16 sps:$4 sm:$0xff]   ;;  %v4242_v43 = vld [vmem:[#allocation8 + $0x1ac] ss:$16 sps:$4 sm:$0xff]  }
 0x4c4   : > { %v3646_v26 = vpop.f32.mrf.mxu1  ;;  %v3668_v45 = vpop.f32.mrf.mxu0  ;;  %v4237_v25 = vld [vmem:[#allocation8 + $0x1a0] ss:$16 sps:$4 sm:$0xff]  }
 0x4c5   : > { %v1364_v46 = vadd.f32 %v3645_v44, %v1136_v24  ;;  %v4240_v44 = vld [vmem:[#allocation8 + $0x1a8] ss:$16 sps:$4 sm:$0xff]  }
 0x4c6   : > { %v3647_v48 = vpop.f32.mrf.mxu1  ;;  %v3669_v49 = vpop.f32.mrf.mxu0 }
 0x4c7   : > { %v3648_v27 = vadd.f32 %v3647_v48, %v3646_v26  ;;  %v1405_v52 = vadd.f32 %v3667_v50, %v1364_v46  ;;  %v3670_v54 = vadd.f32 %v3669_v49, %v3668_v45  ;;  %v4243_v26 = vld [vmem:[#allocation8 + $0x180] ss:$16 sps:$4 sm:$0xff]   ;;  %v4245_v45 = vld [vmem:[#allocation8 + $0x184] ss:$16 sps:$4 sm:$0xff]   ;;  %v4246_v46 = vld [vmem:[#allocation8 + $0x188] ss:$16 sps:$4 sm:$0xff]  }
 0x4c8   : > { %v4248_v48 = vld [vmem:[#allocation8 + $0x18c] ss:$16 sps:$4 sm:$0xff]   ;;  %v4251_v49 = vld [vmem:[#allocation8 + $0x164] ss:$16 sps:$4 sm:$0xff]  }
 0x4c9   : > { %v1367_v53 = vadd.f32 %v3648_v27, %v1136_v24  ;;  %v1411_v58 = vadd.f32 %v1405_v52, %v5045_v59  ;;  %v4239_v24 = vld [vmem:[#allocation8 + $0x1a4] ss:$16 sps:$4 sm:$0xff]   ;;  %v4254_v50 = vld [vmem:[#allocation8 + $0x16c] ss:$16 sps:$4 sm:$0xff]   ;;  %v4249_v27 = vld [vmem:[#allocation8 + $0x160] ss:$16 sps:$4 sm:$0xff]  }
 0x4ca   : > { %v4252_v52 = vld [vmem:[#allocation8 + $0x168] ss:$16 sps:$4 sm:$0xff]  }
 0x4cb   : > { %v1408_v56 = vadd.f32 %v3670_v54, %v1367_v53  ;;  %v4257_v53 = vld [vmem:[#allocation8 + $0x144] ss:$16 sps:$4 sm:$0xff]   ;;  %v4260_v54 = vld [vmem:[#allocation8 + $0x14c] ss:$16 sps:$4 sm:$0xff]  }
 0x4cd   : > { %v1412_v61 = vadd.f32 %v1408_v56, %v5047_v60  ;;  %v4255_v56 = vld [vmem:[#allocation8 + $0x140] ss:$16 sps:$4 sm:$0xff]  }
 0x4cf   : > { %v1413_v55 = vpack.c.bf16 %v1412_v61, %v1411_v58 }
 0x4d1   : > { %v1414_v62 = vunpack.c.l.bf16 %v1413_v55  ;;  %v1415_v63 = vunpack.c.h.bf16 %v1413_v55 }
 0x4d3   : > { %v1416_v1 = vsub.f32 %v1411_v58, %v1414_v62  ;;  %v1417_v57 = vsub.f32 %v1412_v61, %v1415_v63  ;;  %v4261_v62 = vld [vmem:[#allocation8 + $0x120] ss:$16 sps:$4 sm:$0xff]   ;;  %v4264_v63 = vld [vmem:[#allocation8 + $0x128] ss:$16 sps:$4 sm:$0xff]  }
 0x4d5   : > { %v1418_v2 = vpack.c.bf16 %v1417_v57, %v1416_v1  ;;  %v4269_v1 = vld [vmem:[#allocation8 + $0x104] ss:$16 sps:$4 sm:$0xff]   ;;  %v4272_v57 = vld [vmem:[#allocation8 + $0x10c] ss:$16 sps:$4 sm:$0xff]  }
 0x4d7   : > { %1451 = vmatprep.mubr.bf16.mxu1 %v1418_v2  ;;  %v4267_v2 = vld [vmem:[#allocation8 + $0x100] ss:$16 sps:$4 sm:$0xff]  }
 0x4d8   : > { %1452 = vmatmul.mubr.bf16.vlgmr.msra.gmra.mxu1 %v1413_v55  ;;  %v4266_v55 = vld [vmem:[#allocation8 + $0x12c] ss:$16 sps:$4 sm:$0xff]  }
 0x4d9   : > { %1784 = vmatprep.mubr.bf16.mxu1 %v4710_v38  ;;  %1753 = vmatpush1.bf16.msra.mxu1 %v4225_v3  ;;  %v4270_v3 = vld [vmem:[#allocation8 + $0x108] ss:$16 sps:$4 sm:$0xff]  }
 0x4da   : > { %1754 = vmatprep.subr.bf16.mxu1 %v4233_v18 }
 0x4dd   : > { %1755 = vmatpush1.bf16.msra.mxu1 %v4231_v22 }
 0x4de   : > { %1756 = vmatprep.subr.bf16.mxu1 %v4239_v24 }
 0x4e1   : > { %1757 = vmatpush1.bf16.msra.mxu1 %v4237_v25 }
 0x4e2   : > { %1758 = vmatprep.subr.bf16.mxu1 %v4245_v45  ;;  %v4277_v45 = vld [vmem:[#allocation10 + $0x170] sm:$0xff]  }
 0x4e5   : > { %1759 = vmatpush1.bf16.msra.mxu1 %v4243_v26  ;;  %v4276_v26 = vld [vmem:[#allocation10 + $0x1b8] sm:$0xff]  }
 0x4e6   : > { %1760 = vmatprep.subr.bf16.mxu1 %v4251_v49  ;;  %v4283_v49 = vld [vmem:[#allocation10 + $0x128] sm:$0xff]  }
 0x4e9   : > { %1761 = vmatpush1.bf16.msra.mxu1 %v4249_v27  ;;  %v4285_v27 = vld [vmem:[#allocation10 + $0x160] sm:$0xff]  }
 0x4ea   : > { %1762 = vmatprep.subr.bf16.mxu1 %v4257_v53  ;;  %v4287_v53 = vld [vmem:[#allocation10 + $0x120] sm:$0xff]  }
 0x4ed   : > { %1763 = vmatpush1.bf16.msra.mxu1 %v4255_v56  ;;  %v4289_v56 = vld [vmem:[#allocation10 + $0x158] sm:$0xff]  }
 0x598   : > { %v3687_v6 = vpop.f32.mrf.mxu1 }
 0x59a   : > { %v3688_v7 = vpop.f32.mrf.mxu1 }
 0x59b   : > { %v3689_v8 = vadd.f32 %v3688_v7, %v3687_v6 }
 0x59c   : > { %v3690_v9 = vpop.f32.mrf.mxu1 }
 0x59d   : > { %v5129_v11 = vsub.f32 %v1411_v58, %v3689_v8  ;;  %v4258_v58 = vld [vmem:[#allocation8 + $0x148] ss:$16 sps:$4 sm:$0xff]  }
 0x59e   : > { %v3691_v10 = vpop.f32.mrf.mxu1 }
 0x59f   : > { %v3692_v12 = vadd.f32 %v3691_v10, %v3690_v9  ;;  %v1462_v14 = vmul.f32 %v5129_v11, %v5129_v11 }
 0x5a1   : > { %v5131_v13 = vsub.f32 %v1412_v61, %v3692_v12  ;;  %v4263_v61 = vld [vmem:[#allocation8 + $0x124] ss:$16 sps:$4 sm:$0xff]  }
 0x5a2   : > { %1764 = vmatprep.subr.bf16.mxu1 %v4263_v61  ;;  %v4291_v61 = vld [vmem:[#allocation10 + $0x118] sm:$0xff]  }
 0x5a3   : > { %v1463_v15 = vmul.f32 %v5131_v13, %v5131_v13  ;;  %1765 = vmatpush1.bf16.msra.mxu1 %v4261_v62  ;;  %v4293_v62 = vld [vmem:[#allocation10 + $0x150] sm:$0xff]  }
 0x5a4   : > { %1766 = vmatprep.subr.bf16.mxu1 %v4269_v1  ;;  %v4295_v1 = vld [vmem:[#allocation10 + $0x110] sm:$0xff]  }
 0x5a5   : > { %v1464_v17 = vpack.c.bf16 %v1463_v15, %v1462_v14  ;;  %v5139_v14 = vsub.s32 5, %v5014_v29 }
 0x5a7   : > { %3940 = vmatmul.mubr.bf16.vlgmr.msra.gmra.mxu0 %v1464_v17  ;;  %1767 = vmatpush1.bf16.msra.mxu1 %v4267_v2  ;;  %v1513_v17 = vrot.slane %v5019_v31, %v5139_v14  ;;  %v4279_v31 = vld [vmem:[#allocation10 + $0x130] sm:$0xff]   ;;  %v4297_v2 = vld [vmem:[#allocation10 + $0x148] sm:$0xff]  }
 0x5a8   : > { %1796 = vmatpush1.bf16.msra.mxu0 %v4228_v16  ;;  %1827 = vmatprep.mubr.bf16.mxu0 %v4710_v38 }
 0x5a9   : > { %1797 = vmatprep.subr.bf16.mxu0 %v4236_v19  ;;  %3702 = vmatprep.subr.bf16.mxu1 %v4273_v4  ;;  %v4299_v4 = vld [vmem:[#allocation10 + $0x108] sm:$0xff]  }
 0x5ac   : > { %1798 = vmatpush1.bf16.msra.mxu0 %v4234_v23  ;;  %v1519_v23 = vrot.slane %v5121_v21, %v5017_v30  ;;  %v4281_v30 = vld [vmem:[#allocation10 + $0x168] sm:$0xff]  }
 0x5ad   : > { %1799 = vmatprep.subr.bf16.mxu0 %v4242_v43 }
 0x5b0   : > { %1800 = vmatpush1.bf16.msra.mxu0 %v4240_v44  ;;  %v4275_v44 = vld [vmem:[#allocation10 + $0x138] sm:$0xff]  }
 0x5b1   : > { %1801 = vmatprep.subr.bf16.mxu0 %v4248_v48  ;;  %v4282_v48 = vld [vmem:[#allocation10 + $0x1e8] sm:$0xff]  }
 0x5b4   : > { %1802 = vmatpush1.bf16.msra.mxu0 %v4246_v46  ;;  %v4278_v46 = vld [vmem:[#allocation10 + $0x1f0] sm:$0xff]  }
 0x5b5   : > { %1803 = vmatprep.subr.bf16.mxu0 %v4254_v50  ;;  %v4284_v50 = vld [vmem:[#allocation10 + $0x1a8] sm:$0xff]  }
 0x5b8   : > { %1804 = vmatpush1.bf16.msra.mxu0 %v4252_v52  ;;  %v4286_v52 = vld [vmem:[#allocation10 + $0x1e0] sm:$0xff]  }
 0x5b9   : > { %1805 = vmatprep.subr.bf16.mxu0 %v4260_v54  ;;  %v4288_v54 = vld [vmem:[#allocation10 + $0x1a0] sm:$0xff]  }
 0x5bc   : > { %1806 = vmatpush1.bf16.msra.mxu0 %v4258_v58  ;;  %v4290_v58 = vld [vmem:[#allocation10 + $0x1d8] sm:$0xff]  }
 0x5bd   : > { %1807 = vmatprep.subr.bf16.mxu0 %v4266_v55  ;;  %v4292_v55 = vld [vmem:[#allocation10 + $0x198] sm:$0xff]  }
 0x5c0   : > { %1808 = vmatpush1.bf16.msra.mxu0 %v4264_v63  ;;  %v4294_v63 = vld [vmem:[#allocation10 + $0x1d0] sm:$0xff]  }
 0x5c1   : > { %1809 = vmatprep.subr.bf16.mxu0 %v4272_v57  ;;  %v4296_v57 = vld [vmem:[#allocation10 + $0x190] sm:$0xff]  }
 0x5c4   : > { %1810 = vmatpush1.bf16.msra.mxu0 %v4270_v3  ;;  %v4298_v3 = vld [vmem:[#allocation10 + $0x1c8] sm:$0xff]  }
 0x5c5   : > { %3724 = vmatprep.subr.bf16.mxu0 %v4274_v5  ;;  %v4300_v5 = vld [vmem:[#allocation10 + $0x188] sm:$0xff]  }
 0x667   : > { %v1499_v6 = vpop.f32.mrf.mxu0 }
 0x668   : > { %v1500_v7 = vadd.f32 1e-05, %v1499_v6  ;;  %v4301_v6 = vld [vmem:[#allocation10 + $0x140] sm:$0xff]  }
 0x669   : > { %v3941_v8 = vpop.f32.mrf.mxu0 }
 0x66a   : > { %4389 = vrsqrt.f32 %v1500_v7  ;;  %v4302_v7 = vld [vmem:[#allocation10 + $0x1c0] sm:$0xff]  }
 0x66b   : > { %v1502_v9 = vpop.f32.mrf.mxu0  ;;  %v4303_v8 = vld [vmem:[#allocation10 + $0x100] sm:$0xff]  }
 0x66c   : > { %v1503_v10 = vadd.f32 1e-05, %v1502_v9  ;;  %v4304_v9 = vld [vmem:[#allocation10 + $0x180] sm:$0xff]  }
 0x66d   : > { %v3942_v12 = vpop.f32.mrf.mxu0 }
 0x66e   : > { %4391 = vrsqrt.f32 %v1503_v10  ;;  %v1563_v10 = vrot.slane %v5058_v41, %v5139_v14  ;;  %v1571_v12 = vrot.slane %v5060_v42, %v5139_v14 }
 0x677   : > { %v4390_v15 = vpop.eup %4389 }
 0x678   : > { %v1508_v16 = vmul.f32 %v4390_v15, %v5129_v11  ;;  %v1559_v15 = vrot.slane %v5058_v41, %v5034_v47 }
 0x67a   : > { %v1514_v22 = vmul.f32 %v1513_v17, %v1508_v16  ;;  %v1567_v16 = vrot.slane %v5060_v42, %v5034_v47 }
 0x67b   : > { %v4392_v18 = vpop.eup %4391 }
 0x67c   : > { %v1509_v19 = vmul.f32 %v4392_v18, %v5131_v13  ;;  %v5147_v43 = vadd.f32 %v1519_v23, %v1514_v22  ;;  %v4280_v13 = vld [vmem:[#allocation10 + $0x1b0] sm:$0xff]   ;;  %v1579_v22 = vrot.slane %v1559_v15, %v5034_v47 }
 0x67e   : > { %v1515_v24 = vmul.f32 %v1513_v17, %v1509_v19  ;;  %v1583_v19 = vrot.slane %v1563_v10, %v5034_v47 }
 0x680   : > { %v5149_v25 = vadd.f32 %v1519_v23, %v1515_v24  ;;  %v1587_v23 = vrot.slane %v1567_v16, %v5034_v47 }
 0x682   : > { %v1522_v11 = vpack.c.bf16 %v5149_v25, %v5147_v43 }
 0x684   : > { %1785 = vmatmul.mubr.bf16.vlgmr.msra.gmra.mxu1 %v1522_v11  ;;  %1828 = vmatmul.mubr.bf16.vlgmr.msra.gmra.mxu0 %v1522_v11 }
 0x685   : > { %3703 = vmatpush3.bf16.msra.mxu1 %v4275_v44  ;;  %3725 = vmatpush3.bf16.msra.mxu0 %v4276_v26 }
 0x686   : > { %3704 = vmatprep.subr.bf16.mxu1 %v4277_v45  ;;  %3726 = vmatprep.subr.bf16.mxu0 %v4278_v46 }
 0x689   : > { %3705 = vmatpush3.bf16.msra.mxu1 %v4279_v31  ;;  %3727 = vmatpush3.bf16.msra.mxu0 %v4280_v13 }
 0x68a   : > { %3706 = vmatprep.subr.bf16.mxu1 %v4281_v30  ;;  %3728 = vmatprep.subr.bf16.mxu0 %v4282_v48 }
 0x68d   : > { %3707 = vmatpush3.bf16.msra.mxu1 %v4283_v49  ;;  %3729 = vmatpush3.bf16.msra.mxu0 %v4284_v50 }
 0x68e   : > { %3708 = vmatprep.subr.bf16.mxu1 %v4285_v27  ;;  %3730 = vmatprep.subr.bf16.mxu0 %v4286_v52 }
 0x691   : > { %3709 = vmatpush3.bf16.msra.mxu1 %v4287_v53  ;;  %3731 = vmatpush3.bf16.msra.mxu0 %v4288_v54 }
 0x692   : > { %3710 = vmatprep.subr.bf16.mxu1 %v4289_v56  ;;  %3732 = vmatprep.subr.bf16.mxu0 %v4290_v58 }
 0x695   : > { %3711 = vmatpush3.bf16.msra.mxu1 %v4291_v61  ;;  %3733 = vmatpush3.bf16.msra.mxu0 %v4292_v55 }
 0x696   : > { %3712 = vmatprep.subr.bf16.mxu1 %v4293_v62  ;;  %3734 = vmatprep.subr.bf16.mxu0 %v4294_v63 }
 0x699   : > { %3713 = vmatpush3.bf16.msra.mxu1 %v4295_v1  ;;  %3735 = vmatpush3.bf16.msra.mxu0 %v4296_v57 }
 0x69a   : > { %3714 = vmatprep.subr.bf16.mxu1 %v4297_v2  ;;  %3736 = vmatprep.subr.bf16.mxu0 %v4298_v3  ;;  %v5211_v2 = vld [vmem:[#allocation7] sm:$0xff]  }
 0x69d   : > { %3715 = vmatpush3.bf16.msra.mxu1 %v4299_v4  ;;  %3737 = vmatpush3.bf16.msra.mxu0 %v4300_v5  ;;  %v1918_v5 = vrot.slane %v5121_v21, %v5056_v40 }
 0x69e   : > { %3716 = vmatprep.subr.bf16.mxu1 %v4301_v6  ;;  %3738 = vmatprep.subr.bf16.mxu0 %v4302_v7 }
 0x6a1   : > { %3717 = vmatpush3.bf16.msra.mxu1 %v4303_v8  ;;  %3739 = vmatpush3.bf16.msra.mxu0 %v4304_v9 }
 0x6a2   : > { %3746 = vmatprep.subr.bf16.mxu1 %v5051_v39  ;;  %3943 = vmatprep.subr.bf16.mxu0 %v4708_v0  ;;  %v1591_v39 = vrot.slane %v1571_v12, %v5034_v47 }
 0x744   : > { %v1786_v17 = vpop.f32.mrf.mxu1  ;;  %v1829_v18 = vpop.f32.mrf.mxu0 }
 0x745   : > { %v1787_v13 = vadd.f32 %v1786_v17, %v1579_v22  ;;  %v1830_v42 = vadd.f32 %v1829_v18, %v1587_v23 }
 0x746   : > { %v1788_v24 = vpop.f32.mrf.mxu1  ;;  %v1831_v44 = vpop.f32.mrf.mxu0 }
 0x747   : > { %v1789_v45 = vadd.f32 %v1788_v24, %v1583_v19  ;;  %v1832_v46 = vadd.f32 %v1831_v44, %v1591_v39  ;;  %v1838_v61 = vmax.f32 %v1787_v13, 0.0  ;;  %v1840_v55 = vmax.f32 %v1830_v42, 0.0  ;;  %v4305_v13 = vld [vmem:[#allocation8 + $0x2e0] ss:$16 sps:$4 sm:$0xff]   ;;  %v4307_v42 = vld [vmem:[#allocation8 + $0x2e4] ss:$16 sps:$4 sm:$0xff]  }
 0x748   : > { %v1790_v26 = vpop.f32.mrf.mxu1  ;;  %v1833_v11 = vpop.f32.mrf.mxu0 }
 0x749   : > { %v1791_v41 = vadd.f32 %v1790_v26, %v1579_v22  ;;  %v1834_v31 = vadd.f32 %v1833_v11, %v1587_v23  ;;  %v1839_v53 = vmax.f32 %v1789_v45, 0.0  ;;  %v1841_v54 = vmax.f32 %v1832_v46, 0.0 }
 0x74a   : > { %v1792_v30 = vpop.f32.mrf.mxu1  ;;  %v1835_v48 = vpop.f32.mrf.mxu0 }
 0x74b   : > { %v1793_v49 = vadd.f32 %v1792_v30, %v1583_v19  ;;  %v1836_v50 = vadd.f32 %v1835_v48, %v1591_v39  ;;  %v1842_v27 = vmax.f32 %v1791_v41, 0.0  ;;  %v1844_v52 = vmax.f32 %v1834_v31, 0.0  ;;  %v4310_v30 = vld [vmem:[#allocation8 + $0x2ec] ss:$16 sps:$4 sm:$0xff]  }
 0x74d   : > { %v1843_v56 = vmax.f32 %v1793_v49, 0.0  ;;  %v1845_v58 = vmax.f32 %v1836_v50, 0.0  ;;  %v1846_v1 = vpack.c.bf16 %v1842_v27, %v1838_v61  ;;  %v1848_v57 = vpack.c.bf16 %v1844_v52, %v1840_v55  ;;  %v4313_v55 = vld [vmem:[#allocation8 + $0x2c4] ss:$16 sps:$4 sm:$0xff]  }
 0x74f   : > { %v1847_v62 = vpack.c.bf16 %v1843_v56, %v1839_v53  ;;  %v1849_v63 = vpack.c.bf16 %v1845_v58, %v1841_v54  ;;  %v4308_v58 = vld [vmem:[#allocation8 + $0x2e8] ss:$16 sps:$4 sm:$0xff]  }
 0x751   : > { %2143 = vmatprep.mubr.bf16.mxu1 %v1847_v62  ;;  %2184 = vmatprep.mubr.bf16.mxu0 %v1849_v63  ;;  %v4316_v62 = vld [vmem:[#allocation8 + $0x2cc] ss:$16 sps:$4 sm:$0xff]   ;;  %v4311_v63 = vld [vmem:[#allocation8 + $0x2c0] ss:$16 sps:$4 sm:$0xff]  }
 0x752   : > { %2144 = vmatmul.mubr.bf16.vlgmr.msra.gmra.mxu1 %v1846_v1  ;;  %2185 = vmatmul.mubr.bf16.vlgmr.msra.gmra.mxu0 %v1848_v57  ;;  %v4314_v1 = vld [vmem:[#allocation8 + $0x2c8] ss:$16 sps:$4 sm:$0xff]   ;;  %v4319_v57 = vld [vmem:[#allocation8 + $0x2a4] ss:$16 sps:$4 sm:$0xff]  }
 0x753   : > { %3747 = vmatpush3.bf16.msra.mxu1 %v5074_v28  ;;  %3944 = vmatpush3.bf16.msra.mxu0 %v5074_v28  ;;  %v5183_v28 = vld [vmem:[#allocation7 + $0x58] sm:$0xff]  }
 0x754   : > { %3748 = vmatprep.subr.bf16.mxu1 %v5078_v32  ;;  %3945 = vmatprep.subr.bf16.mxu0 %v4708_v0  ;;  %v5187_v32 = vld [vmem:[#allocation7 + $0x18] sm:$0xff]  }
 0x755   : > { %3959 = vmatprep.mubr.msk.bf16.mxu0 %vm4709_vm0, %v4708_v0 }
 0x757   : > { %3749 = vmatpush3.bf16.msra.mxu1 %v5084_v33  ;;  %3946 = vmatpush3.bf16.msra.mxu0 %v5084_v33  ;;  %v5191_v33 = vld [vmem:[#allocation7 + $0x50] sm:$0xff]  }
 0x758   : > { %3750 = vmatprep.subr.bf16.mxu1 %v5088_v34  ;;  %3947 = vmatprep.subr.bf16.mxu0 %v4708_v0  ;;  %v5195_v34 = vld [vmem:[#allocation7 + $0x10] sm:$0xff]  }
 0x75b   : > { %3751 = vmatpush3.bf16.msra.mxu1 %v5092_v35  ;;  %3948 = vmatpush3.bf16.msra.mxu0 %v5092_v35  ;;  %v5199_v35 = vld [vmem:[#allocation7 + $0x48] sm:$0xff]  }
 0x75c   : > { %3752 = vmatprep.subr.bf16.mxu1 %v5096_v36  ;;  %3949 = vmatprep.subr.bf16.mxu0 %v4708_v0  ;;  %v5203_v36 = vld [vmem:[#allocation7 + $0x8] sm:$0xff]  }
 0x75f   : > { %3753 = vmatpush3.bf16.msra.mxu1 %v5100_v37  ;;  %3950 = vmatpush3.bf16.msra.mxu0 %v5100_v37  ;;  %v5207_v37 = vld [vmem:[#allocation7 + $0x40] sm:$0xff]  }
 0x760   : > { %3754 = vmatprep.subr.bf16.mxu1 %v5183_v28  ;;  %3951 = vmatprep.subr.bf16.mxu0 %v4708_v0 }
 0x763   : > { %3755 = vmatpush3.bf16.msra.mxu1 %v5187_v32  ;;  %3952 = vmatpush3.bf16.msra.mxu0 %v5187_v32 }
 0x764   : > { %3756 = vmatprep.subr.bf16.mxu1 %v5191_v33  ;;  %3953 = vmatprep.subr.bf16.mxu0 %v4708_v0 }
 0x767   : > { %3757 = vmatpush3.bf16.msra.mxu1 %v5195_v34  ;;  %3954 = vmatpush3.bf16.msra.mxu0 %v5195_v34 }
 0x768   : > { %3758 = vmatprep.subr.bf16.mxu1 %v5199_v35  ;;  %3955 = vmatprep.subr.bf16.mxu0 %v4708_v0 }
 0x76b   : > { %3759 = vmatpush3.bf16.msra.mxu1 %v5203_v36  ;;  %3956 = vmatpush3.bf16.msra.mxu0 %v5203_v36 }
 0x76c   : > { %3760 = vmatprep.subr.bf16.mxu1 %v5207_v37  ;;  %3957 = vmatprep.subr.bf16.mxu0 %v4708_v0 }
 0x76f   : > { %3761 = vmatpush3.bf16.msra.mxu1 %v5211_v2  ;;  %3958 = vmatpush3.bf16.msra.mxu0 %v5211_v2 }
 0x770   : > { %2534 = vmatprep.subr.bf16.mxu1 %v4307_v42  ;;  %2577 = vmatprep.subr.bf16.mxu0 %v4310_v30 }
 0x812   : > { %v3718_v3 = vpop.f32.mrf.mxu1  ;;  %v3740_v4 = vpop.f32.mrf.mxu0 }
 0x814   : > { %v3719_v6 = vpop.f32.mrf.mxu1  ;;  %v3741_v7 = vpop.f32.mrf.mxu0 }
 0x815   : > { %v3720_v8 = vadd.f32 %v3719_v6, %v3718_v3  ;;  %v3742_v17 = vadd.f32 %v3741_v7, %v3740_v4  ;;  %v4322_v3 = vld [vmem:[#allocation8 + $0x2ac] ss:$16 sps:$4 sm:$0xff]   ;;  %v4317_v4 = vld [vmem:[#allocation8 + $0x2a0] ss:$16 sps:$4 sm:$0xff]   ;;  %v4325_v7 = vld [vmem:[#allocation8 + $0x284] ss:$16 sps:$4 sm:$0xff]  }
 0x816   : > { %v3721_v9 = vpop.f32.mrf.mxu1  ;;  %v3743_v10 = vpop.f32.mrf.mxu0  ;;  %v4323_v6 = vld [vmem:[#allocation8 + $0x280] ss:$16 sps:$4 sm:$0xff]  }
 0x817   : > { %v2146_v12 = vadd.f32 %v3720_v8, %v1918_v5  ;;  %v4326_v8 = vld [vmem:[#allocation8 + $0x288] ss:$16 sps:$4 sm:$0xff]  }
 0x818   : > { %v3722_v15 = vpop.f32.mrf.mxu1  ;;  %v3744_v16 = vpop.f32.mrf.mxu0 }
 0x819   : > { %v3723_v18 = vadd.f32 %v3722_v15, %v3721_v9  ;;  %v2187_v19 = vadd.f32 %v3742_v17, %v2146_v12  ;;  %v3745_v22 = vadd.f32 %v3744_v16, %v3743_v10  ;;  %v4331_v9 = vld [vmem:[#allocation8 + $0x264] ss:$16 sps:$4 sm:$0xff]   ;;  %v4334_v10 = vld [vmem:[#allocation8 + $0x26c] ss:$16 sps:$4 sm:$0xff]   ;;  %v4329_v12 = vld [vmem:[#allocation8 + $0x260] ss:$16 sps:$4 sm:$0xff]  }
 0x81a   : > { %v4332_v15 = vld [vmem:[#allocation8 + $0x268] ss:$16 sps:$4 sm:$0xff]   ;;  %v4337_v16 = vld [vmem:[#allocation8 + $0x244] ss:$16 sps:$4 sm:$0xff]   ;;  %v4340_v17 = vld [vmem:[#allocation8 + $0x24c] ss:$16 sps:$4 sm:$0xff]  }
 0x81b   : > { %v2149_v39 = vadd.f32 %v3723_v18, %v1918_v5  ;;  %v2193_v24 = vadd.f32 %v2187_v19, %v5147_v43  ;;  %v4320_v5 = vld [vmem:[#allocation8 + $0x2a8] ss:$16 sps:$4 sm:$0xff]   ;;  %v4335_v18 = vld [vmem:[#allocation8 + $0x240] ss:$16 sps:$4 sm:$0xff]  }
 0x81c   : > { %v4338_v19 = vld [vmem:[#allocation8 + $0x248] ss:$16 sps:$4 sm:$0xff]  }
 0x81d   : > { %v2190_v23 = vadd.f32 %v3745_v22, %v2149_v39  ;;  %v4343_v39 = vld [vmem:[#allocation8 + $0x224] ss:$16 sps:$4 sm:$0xff]   ;;  %v4346_v22 = vld [vmem:[#allocation8 + $0x22c] ss:$16 sps:$4 sm:$0xff]  }
 0x81f   : > { %v2194_v44 = vadd.f32 %v2190_v23, %v5149_v25  ;;  %v4341_v23 = vld [vmem:[#allocation8 + $0x220] ss:$16 sps:$4 sm:$0xff]  }
 0x821   : > { %v2195_v26 = vpack.c.bf16 %v2194_v44, %v2193_v24 }
 0x823   : > { %v2196_v11 = vunpack.c.l.bf16 %v2195_v26  ;;  %v2197_v45 = vunpack.c.h.bf16 %v2195_v26 }
 0x825   : > { %v2198_v46 = vsub.f32 %v2193_v24, %v2196_v11  ;;  %v2199_v41 = vsub.f32 %v2194_v44, %v2197_v45  ;;  %v4347_v11 = vld [vmem:[#allocation8 + $0x200] ss:$16 sps:$4 sm:$0xff]   ;;  %v4350_v45 = vld [vmem:[#allocation8 + $0x208] ss:$16 sps:$4 sm:$0xff]  }
 0x827   : > { %v2200_v31 = vpack.c.bf16 %v2199_v41, %v2198_v46  ;;  %v4353_v46 = vld [vmem:[#allocation10 + $0x278] sm:$0xff]  }
 0x828   : > { %v4354_v41 = vld [vmem:[#allocation10 + $0x2f8] sm:$0xff]  }
 0x829   : > { %2233 = vmatprep.mubr.bf16.mxu1 %v2200_v31 }
 0x82a   : > { %2234 = vmatmul.mubr.bf16.vlgmr.msra.gmra.mxu1 %v2195_v26  ;;  %v4352_v26 = vld [vmem:[#allocation8 + $0x20c] ss:$16 sps:$4 sm:$0xff]  }
 0x82b   : > { %2566 = vmatprep.mubr.bf16.mxu1 %v4710_v38  ;;  %2535 = vmatpush1.bf16.msra.mxu1 %v4305_v13 }
 0x82c   : > { %2536 = vmatprep.subr.bf16.mxu1 %v4313_v55  ;;  %v2301_v55 = vrot.slane %v5121_v21, %v5034_v47  ;;  %v4361_v47 = vld [vmem:[#allocation10 + $0x268] sm:$0xff]  }
 0x82d   : > { %v4362_v21 = vld [vmem:[#allocation10 + $0x2e8] sm:$0xff]  }
 0x82f   : > { %2537 = vmatpush1.bf16.msra.mxu1 %v4311_v63 }
 0x830   : > { %2538 = vmatprep.subr.bf16.mxu1 %v4319_v57  ;;  %v4355_v57 = vld [vmem:[#allocation10 + $0x238] sm:$0xff]  }
 0x833   : > { %2539 = vmatpush1.bf16.msra.mxu1 %v4317_v4  ;;  %v4357_v4 = vld [vmem:[#allocation10 + $0x270] sm:$0xff]  }
 0x834   : > { %2540 = vmatprep.subr.bf16.mxu1 %v4325_v7  ;;  %v4363_v7 = vld [vmem:[#allocation10 + $0x228] sm:$0xff]  }
 0x837   : > { %2541 = vmatpush1.bf16.msra.mxu1 %v4323_v6  ;;  %v4360_v6 = vld [vmem:[#allocation10 + $0x2b0] sm:$0xff]  }
 0x838   : > { %2542 = vmatprep.subr.bf16.mxu1 %v4331_v9  ;;  %v4366_v9 = vld [vmem:[#allocation10 + $0x2e0] sm:$0xff]  }
 0x83b   : > { %2543 = vmatpush1.bf16.msra.mxu1 %v4329_v12  ;;  %v4368_v12 = vld [vmem:[#allocation10 + $0x2a0] sm:$0xff]  }
 0x83c   : > { %2544 = vmatprep.subr.bf16.mxu1 %v4337_v16  ;;  %v4370_v16 = vld [vmem:[#allocation10 + $0x2d8] sm:$0xff]  }
 0x83f   : > { %2545 = vmatpush1.bf16.msra.mxu1 %v4335_v18  ;;  %v4372_v18 = vld [vmem:[#allocation10 + $0x298] sm:$0xff]  }
 0x840   : > { %2546 = vmatprep.subr.bf16.mxu1 %v4343_v39  ;;  %v4374_v39 = vld [vmem:[#allocation10 + $0x2d0] sm:$0xff]  }
 0x843   : > { %2547 = vmatpush1.bf16.msra.mxu1 %v4341_v23  ;;  %v4376_v23 = vld [vmem:[#allocation10 + $0x290] sm:$0xff]  }
 0x8ea   : > { %v3762_v48 = vpop.f32.mrf.mxu1 }
 0x8ec   : > { %v3763_v43 = vpop.f32.mrf.mxu1 }
 0x8ed   : > { %v3764_v49 = vadd.f32 %v3763_v43, %v3762_v48 }
 0x8ee   : > { %v3765_v25 = vpop.f32.mrf.mxu1 }
 0x8ef   : > { %v5220_v27 = vsub.f32 %v2193_v24, %v3764_v49  ;;  %v4344_v24 = vld [vmem:[#allocation8 + $0x228] ss:$16 sps:$4 sm:$0xff]   ;;  %v5230_v49 = vsub.s32 6, %v5014_v29 }
 0x8f0   : > { %v3766_v50 = vpop.f32.mrf.mxu1 }
 0x8f1   : > { %v3767_v52 = vadd.f32 %v3766_v50, %v3765_v25  ;;  %v2244_v54 = vmul.f32 %v5220_v27, %v5220_v27 }
 0x8f3   : > { %v5222_v53 = vsub.f32 %v2194_v44, %v3767_v52  ;;  %v4349_v44 = vld [vmem:[#allocation8 + $0x204] ss:$16 sps:$4 sm:$0xff]  }
 0x8f4   : > { %2548 = vmatprep.subr.bf16.mxu1 %v4349_v44  ;;  %v5233_v52 = vld [vmem:[#allocation11] sm:$0xff]  ;;  %v4378_v44 = vld [vmem:[#allocation10 + $0x2c8] sm:$0xff]  }
 0x8f5   : > { %v2245_v56 = vmul.f32 %v5222_v53, %v5222_v53  ;;  %2549 = vmatpush1.bf16.msra.mxu1 %v4347_v11  ;;  %v4380_v11 = vld [vmem:[#allocation10 + $0x288] sm:$0xff]  }
 0x8f6   : > { %3777 = vmatprep.subr.bf16.mxu1 %v4353_v46  ;;  %v4382_v46 = vld [vmem:[#allocation10 + $0x2c0] sm:$0xff]  }
 0x8f7   : > { %v2246_v61 = vpack.c.bf16 %v2245_v56, %v2244_v54  ;;  %v2295_v54 = vrot.slane %v5233_v52, %v5230_v49 }
 0x8f9   : > { %3960 = vmatmul.mubr.bf16.vlgmr.msra.gmra.mxu0 %v2246_v61 }
 0x8fa   : > { %2578 = vmatpush1.bf16.msra.mxu0 %v4308_v58  ;;  %2609 = vmatprep.mubr.bf16.mxu0 %v4710_v38  ;;  %v4328_v38 = vld [vmem:[#allocation8 + $0x28c] ss:$16 sps:$4 sm:$0xff]  }
 0x8fb   : > { %2579 = vmatprep.subr.bf16.mxu0 %v4316_v62 }
 0x8fe   : > { %2580 = vmatpush1.bf16.msra.mxu0 %v4314_v1 }
 0x8ff   : > { %2581 = vmatprep.subr.bf16.mxu0 %v4322_v3  ;;  %v4356_v3 = vld [vmem:[#allocation10 + $0x2b8] sm:$0xff]  }
 0x902   : > { %2582 = vmatpush1.bf16.msra.mxu0 %v4320_v5  ;;  %v4358_v5 = vld [vmem:[#allocation10 + $0x2f0] sm:$0xff]  }
 0x903   : > { %2583 = vmatprep.subr.bf16.mxu0 %v4328_v38  ;;  %v4365_v38 = vld [vmem:[#allocation10 + $0x260] sm:$0xff]  }
 0x906   : > { %2584 = vmatpush1.bf16.msra.mxu0 %v4326_v8  ;;  %v4364_v8 = vld [vmem:[#allocation10 + $0x2a8] sm:$0xff]  }
 0x907   : > { %2585 = vmatprep.subr.bf16.mxu0 %v4334_v10  ;;  %v4367_v10 = vld [vmem:[#allocation10 + $0x220] sm:$0xff]  }
 0x90a   : > { %2586 = vmatpush1.bf16.msra.mxu0 %v4332_v15  ;;  %v4369_v15 = vld [vmem:[#allocation10 + $0x258] sm:$0xff]  }
 0x90b   : > { %2587 = vmatprep.subr.bf16.mxu0 %v4340_v17  ;;  %v4371_v17 = vld [vmem:[#allocation10 + $0x218] sm:$0xff]  }
 0x90e   : > { %2588 = vmatpush1.bf16.msra.mxu0 %v4338_v19  ;;  %v4373_v19 = vld [vmem:[#allocation10 + $0x250] sm:$0xff]  }
 0x90f   : > { %2589 = vmatprep.subr.bf16.mxu0 %v4346_v22  ;;  %v4375_v22 = vld [vmem:[#allocation10 + $0x210] sm:$0xff]  }
 0x912   : > { %2590 = vmatpush1.bf16.msra.mxu0 %v4344_v24  ;;  %v4377_v24 = vld [vmem:[#allocation10 + $0x248] sm:$0xff]  }
 0x913   : > { %2591 = vmatprep.subr.bf16.mxu0 %v4352_v26  ;;  %v4379_v26 = vld [vmem:[#allocation10 + $0x208] sm:$0xff]  }
 0x916   : > { %2592 = vmatpush1.bf16.msra.mxu0 %v4350_v45  ;;  %v4381_v45 = vld [vmem:[#allocation10 + $0x240] sm:$0xff]  }
 0x917   : > { %3799 = vmatprep.subr.bf16.mxu0 %v4354_v41  ;;  %v4383_v41 = vld [vmem:[#allocation10 + $0x200] sm:$0xff]  }
 0x9b9   : > { %v2281_v31 = vpop.f32.mrf.mxu0 }
 0x9ba   : > { %v2282_v13 = vadd.f32 1e-05, %v2281_v31  ;;  %v4384_v31 = vld [vmem:[#allocation10 + $0x280] sm:$0xff]  }
 0x9bb   : > { %v3961_v42 = vpop.f32.mrf.mxu0 }
 0x9bc   : > { %4393 = vrsqrt.f32 %v2282_v13  ;;  %v5246_v13 = vld [vmem:[#allocation7 + $0x78] sm:$0xff]   ;;  %v4423_v42 = vld [vmem:[#allocation13] sm:$0x77] }
 0x9bd   : > { %v2284_v30 = vpop.f32.mrf.mxu0 }
 0x9be   : > { %v2285_v48 = vadd.f32 1e-05, %v2284_v30  ;;  %v2345_v30 = vrot.slane %v4423_v42, %v5230_v49 }
 0x9bf   : > { %v3962_v43 = vpop.f32.mrf.mxu0 }
 0x9c0   : > { %4395 = vrsqrt.f32 %v2285_v48  ;;  %v4424_v48 = vld [vmem:[#allocation13 + $0x8] sm:$0x77] }
 0x9c1   : > { %v2353_v43 = vrot.slane %v4424_v48, %v5230_v49 }
 0x9c9   : > { %v4394_v25 = vpop.eup %4393 }
 0x9ca   : > { %v2290_v50 = vmul.f32 %v4394_v25, %v5220_v27  ;;  %v2341_v25 = vrot.slane %v4423_v42, %v5040_v51  ;;  %v5278_v42 = vld [vmem:[#allocation7 + $0x20] sm:$0xff]  }
 0x9cc   : > { %v2296_v61 = vmul.f32 %v2295_v54, %v2290_v50  ;;  %v2349_v50 = vrot.slane %v4424_v48, %v5040_v51 }
 0x9cd   : > { %v4396_v56 = vpop.eup %4395 }
 0x9ce   : > { %v2291_v58 = vmul.f32 %v4396_v56, %v5222_v53  ;;  %v5240_v63 = vadd.f32 %v2301_v55, %v2296_v61  ;;  %v4359_v53 = vld [vmem:[#allocation10 + $0x230] sm:$0xff]   ;;  %v2373_v61 = vrot.slane %v2353_v43, %v5040_v51  ;;  %v5300_v43 = vld [vmem:[#allocation11 + $0x8] sm:$0xff] }
 0x9d0   : > { %v2297_v62 = vmul.f32 %v2295_v54, %v2291_v58  ;;  %v2365_v58 = vrot.slane %v2345_v30, %v5040_v51 }
 0x9d2   : > { %v5242_v1 = vadd.f32 %v2301_v55, %v2297_v62  ;;  %v2361_v55 = vrot.slane %v2341_v25, %v5040_v51  ;;  %v2369_v62 = vrot.slane %v2349_v50, %v5040_v51  ;;  %v2700_v25 = vrot.slane %v5300_v43, %v5139_v14 }
 0x9d4   : > { %v2304_v27 = vpack.c.bf16 %v5242_v1, %v5240_v63 }
 0x9d6   : > { %2567 = vmatmul.mubr.bf16.vlgmr.msra.gmra.mxu1 %v2304_v27  ;;  %2610 = vmatmul.mubr.bf16.vlgmr.msra.gmra.mxu0 %v2304_v27 }
 0x9d7   : > { %3778 = vmatpush3.bf16.msra.mxu1 %v4355_v57  ;;  %3800 = vmatpush3.bf16.msra.mxu0 %v4356_v3 }
 0x9d8   : > { %3779 = vmatprep.subr.bf16.mxu1 %v4357_v4  ;;  %3801 = vmatprep.subr.bf16.mxu0 %v4358_v5 }
 0x9db   : > { %3780 = vmatpush3.bf16.msra.mxu1 %v4359_v53  ;;  %3802 = vmatpush3.bf16.msra.mxu0 %v4360_v6 }
 0x9dc   : > { %3781 = vmatprep.subr.bf16.mxu1 %v4361_v47  ;;  %3803 = vmatprep.subr.bf16.mxu0 %v4362_v21 }
 0x9df   : > { %3782 = vmatpush3.bf16.msra.mxu1 %v4363_v7  ;;  %3804 = vmatpush3.bf16.msra.mxu0 %v4364_v8 }
 0x9e0   : > { %3783 = vmatprep.subr.bf16.mxu1 %v4365_v38  ;;  %3805 = vmatprep.subr.bf16.mxu0 %v4366_v9 }
 0x9e3   : > { %3784 = vmatpush3.bf16.msra.mxu1 %v4367_v10  ;;  %3806 = vmatpush3.bf16.msra.mxu0 %v4368_v12 }
 0x9e4   : > { %3785 = vmatprep.subr.bf16.mxu1 %v4369_v15  ;;  %3807 = vmatprep.subr.bf16.mxu0 %v4370_v16 }
 0x9e7   : > { %3786 = vmatpush3.bf16.msra.mxu1 %v4371_v17  ;;  %3808 = vmatpush3.bf16.msra.mxu0 %v4372_v18 }
 0x9e8   : > { %3787 = vmatprep.subr.bf16.mxu1 %v4373_v19  ;;  %3809 = vmatprep.subr.bf16.mxu0 %v4374_v39 }
 0x9eb   : > { %3788 = vmatpush3.bf16.msra.mxu1 %v4375_v22  ;;  %3810 = vmatpush3.bf16.msra.mxu0 %v4376_v23 }
 0x9ec   : > { %3789 = vmatprep.subr.bf16.mxu1 %v4377_v24  ;;  %3811 = vmatprep.subr.bf16.mxu0 %v4378_v44 }
 0x9ef   : > { %3790 = vmatpush3.bf16.msra.mxu1 %v4379_v26  ;;  %3812 = vmatpush3.bf16.msra.mxu0 %v4380_v11  ;;  %v5258_v26 = vld [vmem:[#allocation7 + $0x38] sm:$0xff]   ;;  %v5262_v11 = vld [vmem:[#allocation7 + $0x70] sm:$0xff]  }
 0x9f0   : > { %3791 = vmatprep.subr.bf16.mxu1 %v4381_v45  ;;  %3813 = vmatprep.subr.bf16.mxu0 %v4382_v46  ;;  %v5268_v45 = vld [vmem:[#allocation7 + $0x30] sm:$0xff]   ;;  %v4428_v46 = vld [vmem:[#allocation7 + $0x68] sm:$0xff]  }
 0x9f3   : > { %3792 = vmatpush3.bf16.msra.mxu1 %v4383_v41  ;;  %3814 = vmatpush3.bf16.msra.mxu0 %v4384_v31  ;;  %v5273_v41 = vld [vmem:[#allocation7 + $0x28] sm:$0xff]   ;;  %v4430_v31 = vld [vmem:[#allocation7 + $0x60] sm:$0xff]  }
 0x9f4   : > { %3821 = vmatprep.subr.bf16.mxu1 %v5246_v13  ;;  %3963 = vmatprep.subr.bf16.mxu0 %v4708_v0 }
 0xa96   : > { %v2568_v54 = vpop.f32.mrf.mxu1  ;;  %v2611_v56 = vpop.f32.mrf.mxu0 }
 0xa97   : > { %v2569_v47 = vadd.f32 %v2568_v54, %v2361_v55  ;;  %v2612_v21 = vadd.f32 %v2611_v56, %v2369_v62 }
 0xa98   : > { %v2570_v57 = vpop.f32.mrf.mxu1  ;;  %v2613_v3 = vpop.f32.mrf.mxu0 }
 0xa99   : > { %v2571_v5 = vadd.f32 %v2570_v57, %v2365_v58  ;;  %v2614_v49 = vadd.f32 %v2613_v3, %v2373_v61  ;;  %v2620_v19 = vmax.f32 %v2569_v47, 0.0  ;;  %v2622_v39 = vmax.f32 %v2612_v21, 0.0 }
 0xa9a   : > { %v2572_v27 = vpop.f32.mrf.mxu1  ;;  %v2615_v4 = vpop.f32.mrf.mxu0 }
 0xa9b   : > { %v2573_v53 = vadd.f32 %v2572_v27, %v2361_v55  ;;  %v2616_v6 = vadd.f32 %v2615_v4, %v2369_v62  ;;  %v2621_v15 = vmax.f32 %v2571_v5, 0.0  ;;  %v2623_v16 = vmax.f32 %v2614_v49, 0.0 }
 0xa9c   : > { %v2574_v7 = vpop.f32.mrf.mxu1  ;;  %v2617_v8 = vpop.f32.mrf.mxu0 }
 0xa9d   : > { %v2575_v38 = vadd.f32 %v2574_v7, %v2365_v58  ;;  %v2618_v9 = vadd.f32 %v2617_v8, %v2373_v61  ;;  %v2624_v10 = vmax.f32 %v2573_v53, 0.0  ;;  %v2626_v12 = vmax.f32 %v2616_v6, 0.0 }
 0xa9f   : > { %v2625_v17 = vmax.f32 %v2575_v38, 0.0  ;;  %v2627_v18 = vmax.f32 %v2618_v9, 0.0  ;;  %v2628_v24 = vpack.c.bf16 %v2624_v10, %v2620_v19  ;;  %v2630_v44 = vpack.c.bf16 %v2626_v12, %v2622_v39 }
 0xaa1   : > { %v2629_v22 = vpack.c.bf16 %v2625_v17, %v2621_v15  ;;  %v2631_v23 = vpack.c.bf16 %v2627_v18, %v2623_v16 }
 0xaa3   : > { %2925 = vmatprep.mubr.bf16.mxu1 %v2629_v22  ;;  %2966 = vmatprep.mubr.bf16.mxu0 %v2631_v23 }
 0xaa4   : > { %2926 = vmatmul.mubr.bf16.vlgmr.msra.gmra.mxu1 %v2628_v24  ;;  %2967 = vmatmul.mubr.bf16.vlgmr.msra.gmra.mxu0 %v2630_v44 }
 0xaa5   : > { %3822 = vmatpush3.bf16.msra.mxu1 %v5258_v26  ;;  %3964 = vmatpush3.bf16.msra.mxu0 %v5258_v26 }
 0xaa6   : > { %3823 = vmatprep.subr.bf16.mxu1 %v5262_v11  ;;  %3965 = vmatprep.subr.bf16.mxu0 %v4708_v0 }
 0xaa7   : > { %3979 = vmatprep.mubr.msk.bf16.mxu0 %vm4709_vm0, %v4708_v0 }
 0xaa9   : > { %3824 = vmatpush3.bf16.msra.mxu1 %v5268_v45  ;;  %3966 = vmatpush3.bf16.msra.mxu0 %v5268_v45 }
 0xaaa   : > { %3825 = vmatprep.subr.bf16.mxu1 %v4428_v46  ;;  %3967 = vmatprep.subr.bf16.mxu0 %v4708_v0 }
 0xaad   : > { %3826 = vmatpush3.bf16.msra.mxu1 %v5273_v41  ;;  %3968 = vmatpush3.bf16.msra.mxu0 %v5273_v41 }
 0xaae   : > { %3827 = vmatprep.subr.bf16.mxu1 %v4430_v31  ;;  %3969 = vmatprep.subr.bf16.mxu0 %v4708_v0 }
 0xab1   : > { %3828 = vmatpush3.bf16.msra.mxu1 %v5278_v42  ;;  %3970 = vmatpush3.bf16.msra.mxu0 %v5278_v42 }
 0xab2   : > { %3829 = vmatprep.subr.bf16.mxu1 %v5183_v28  ;;  %3971 = vmatprep.subr.bf16.mxu0 %v4708_v0 }
 0xab5   : > { %3830 = vmatpush3.bf16.msra.mxu1 %v5187_v32  ;;  %3972 = vmatpush3.bf16.msra.mxu0 %v5187_v32 }
 0xab6   : > { %3831 = vmatprep.subr.bf16.mxu1 %v5191_v33  ;;  %3973 = vmatprep.subr.bf16.mxu0 %v4708_v0 }
 0xab9   : > { %3832 = vmatpush3.bf16.msra.mxu1 %v5195_v34  ;;  %3974 = vmatpush3.bf16.msra.mxu0 %v5195_v34 }
 0xaba   : > { %3833 = vmatprep.subr.bf16.mxu1 %v5199_v35  ;;  %3975 = vmatprep.subr.bf16.mxu0 %v4708_v0 }
 0xabd   : > { %3834 = vmatpush3.bf16.msra.mxu1 %v5203_v36  ;;  %3976 = vmatpush3.bf16.msra.mxu0 %v5203_v36 }
 0xabe   : > { %3835 = vmatprep.subr.bf16.mxu1 %v5207_v37  ;;  %3977 = vmatprep.subr.bf16.mxu0 %v4708_v0 }
 0xac1   : > { %3836 = vmatpush3.bf16.msra.mxu1 %v5211_v2  ;;  %3978 = vmatpush3.bf16.msra.mxu0 %v5211_v2 }
 0xac2   : > { %3852 = vmatprep.subr.bf16.mxu1 %v5246_v13  ;;  %3983 = vmatprep.subr.bf16.mxu0 %v4708_v0 }
 0xb64   : > { %v3793_v30 = vpop.f32.mrf.mxu1  ;;  %v3815_v48 = vpop.f32.mrf.mxu0 }
 0xb66   : > { %v3794_v50 = vpop.f32.mrf.mxu1  ;;  %v3816_v54 = vpop.f32.mrf.mxu0 }
 0xb67   : > { %v3795_v56 = vadd.f32 %v3794_v50, %v3793_v30  ;;  %v3817_v3 = vadd.f32 %v3816_v54, %v3815_v48 }
 0xb68   : > { %v3796_v58 = vpop.f32.mrf.mxu1  ;;  %v3818_v61 = vpop.f32.mrf.mxu0 }
 0xb69   : > { %v2928_v55 = vadd.f32 %v3795_v56, %v2700_v25 }
 0xb6a   : > { %v3797_v62 = vpop.f32.mrf.mxu1  ;;  %v3819_v57 = vpop.f32.mrf.mxu0 }
 0xb6b   : > { %v3798_v27 = vadd.f32 %v3797_v62, %v3796_v58  ;;  %v2969_v13 = vadd.f32 %v3817_v3, %v2928_v55  ;;  %v3820_v5 = vadd.f32 %v3819_v57, %v3818_v61 }
 0xb6d   : > { %v2931_v4 = vadd.f32 %v3798_v27, %v2700_v25  ;;  %v2975_v53 = vadd.f32 %v2969_v13, %v5240_v63 }
 0xb6f   : > { %v2972_v49 = vadd.f32 %v3820_v5, %v2931_v4 }
 0xb71   : > { %v2976_v6 = vadd.f32 %v2972_v49, %v5242_v1 }
 0xb73   : > { %v2977_v47 = vpack.c.bf16 %v2976_v6, %v2975_v53 }
 0xb75   : > { %v2978_v14 = vunpack.c.l.bf16 %v2977_v47  ;;  %v2979_v21 = vunpack.c.h.bf16 %v2977_v47 }
 0xb77   : > { %v2980_v7 = vsub.f32 %v2975_v53, %v2978_v14  ;;  %v2981_v8 = vsub.f32 %v2976_v6, %v2979_v21  ;;  %v3194_v14 = vrot.slane %v5233_v52, %v5056_v40 }
 0xb79   : > { %v2982_v38 = vpack.c.bf16 %v2981_v8, %v2980_v7 }
 0xb7b   : > { %3015 = vmatprep.mubr.bf16.mxu1 %v2982_v38 }
 0xb7c   : > { %3016 = vmatmul.mubr.bf16.vlgmr.msra.gmra.mxu1 %v2977_v47 }
 0xb7d   : > { %3853 = vmatpush3.bf16.msra.mxu1 %v5258_v26 }
 0xb7e   : > { %3854 = vmatprep.subr.bf16.mxu1 %v5262_v11 }
 0xb81   : > { %3855 = vmatpush3.bf16.msra.mxu1 %v5268_v45 }
 0xb82   : > { %3856 = vmatprep.subr.bf16.mxu1 %v4428_v46 }
 0xb85   : > { %3857 = vmatpush3.bf16.msra.mxu1 %v5273_v41 }
 0xb86   : > { %3858 = vmatprep.subr.bf16.mxu1 %v4430_v31 }
 0xb89   : > { %3859 = vmatpush3.bf16.msra.mxu1 %v5278_v42 }
 0xb8a   : > { %3860 = vmatprep.subr.bf16.mxu1 %v5183_v28 }
 0xb8d   : > { %3861 = vmatpush3.bf16.msra.mxu1 %v5187_v32 }
 0xb8e   : > { %3862 = vmatprep.subr.bf16.mxu1 %v5191_v33 }
 0xb91   : > { %3863 = vmatpush3.bf16.msra.mxu1 %v5195_v34 }
 0xb92   : > { %3864 = vmatprep.subr.bf16.mxu1 %v5199_v35 }
 0xb95   : > { %3865 = vmatpush3.bf16.msra.mxu1 %v5203_v36 }
 0xb96   : > { %3866 = vmatprep.subr.bf16.mxu1 %v5207_v37 }
 0xb99   : > { %3867 = vmatpush3.bf16.msra.mxu1 %v5211_v2 }
 0xc3c   : > { %v3837_v63 = vpop.f32.mrf.mxu1 }
 0xc3e   : > { %v3838_v1 = vpop.f32.mrf.mxu1 }
 0xc3f   : > { %v3839_v9 = vadd.f32 %v3838_v1, %v3837_v63 }
 0xc40   : > { %v3840_v10 = vpop.f32.mrf.mxu1 }
 0xc41   : > { %v3024_v28 = vsub.f32 %v2975_v53, %v3839_v9 }
 0xc42   : > { %v3841_v12 = vpop.f32.mrf.mxu1 }
 0xc43   : > { %v3842_v15 = vadd.f32 %v3841_v12, %v3840_v10  ;;  %v3026_v17 = vmul.f32 %v3024_v28, %v3024_v28 }
 0xc45   : > { %v3025_v16 = vsub.f32 %v2976_v6, %v3842_v15  ;;  %v3188_v6 = vrot.slane %v5233_v52, %v1135_v20 }
 0xc47   : > { %v3027_v33 = vmul.f32 %v3025_v16, %v3025_v16 }
 0xc49   : > { %v3028_v18 = vpack.c.bf16 %v3027_v33, %v3026_v17 }
 0xc4b   : > { %3980 = vmatmul.mubr.bf16.vlgmr.msra.gmra.mxu0 %v3028_v18 }
 0xc4c   : > { %3984 = vmatpush3.bf16.msra.mxu0 %v5258_v26  ;;  %3999 = vmatprep.mubr.msk.bf16.mxu0 %vm4709_vm0, %v4708_v0 }
 0xc4d   : > { %3985 = vmatprep.subr.bf16.mxu0 %v4708_v0 }
 0xc50   : > { %3986 = vmatpush3.bf16.msra.mxu0 %v5268_v45 }
 0xc51   : > { %3987 = vmatprep.subr.bf16.mxu0 %v4708_v0 }
 0xc54   : > { %3988 = vmatpush3.bf16.msra.mxu0 %v5273_v41 }
 0xc55   : > { %3989 = vmatprep.subr.bf16.mxu0 %v4708_v0 }
 0xc58   : > { %3990 = vmatpush3.bf16.msra.mxu0 %v5278_v42 }
 0xc59   : > { %3991 = vmatprep.subr.bf16.mxu0 %v4708_v0 }
 0xc5c   : > { %3992 = vmatpush3.bf16.msra.mxu0 %v5187_v32  ;;  %v3076_v32 = vsub.s32 7, %v5014_v29 }
 0xc5d   : > { %3993 = vmatprep.subr.bf16.mxu0 %v4708_v0 }
 0xc60   : > { %3994 = vmatpush3.bf16.msra.mxu0 %v5195_v34  ;;  %v3077_v34 = vrot.slane %v5233_v52, %v3076_v32 }
 0xc61   : > { %3995 = vmatprep.subr.bf16.mxu0 %v4708_v0 }
 0xc64   : > { %3996 = vmatpush3.bf16.msra.mxu0 %v5203_v36 }
 0xc65   : > { %3997 = vmatprep.subr.bf16.mxu0 %v4708_v0  ;;  %v3083_v0 = vrot.slane %v5300_v43, %v5040_v51 }
 0xc68   : > { %3998 = vmatpush3.bf16.msra.mxu0 %v5211_v2 }
 0xd0b   : > { %v3063_v35 = vpop.f32.mrf.mxu0 }
 0xd0c   : > { %v3064_v37 = vadd.f32 1e-05, %v3063_v35 }
 0xd0d   : > { %v3981_v19 = vpop.f32.mrf.mxu0 }
 0xd0e   : > { %4397 = vrsqrt.f32 %v3064_v37 }
 0xd0f   : > { %v3066_v39 = vpop.f32.mrf.mxu0 }
 0xd10   : > { %v3067_v22 = vadd.f32 1e-05, %v3066_v39 }
 0xd11   : > { %v3982_v23 = vpop.f32.mrf.mxu0 }
 0xd12   : > { %4399 = vrsqrt.f32 %v3067_v22 }
 0xd1b   : > { %v4398_v24 = vpop.eup %4397 }
 0xd1c   : > { %v3072_v44 = vmul.f32 %v4398_v24, %v3024_v28 }
 0xd1e   : > { %v3078_v26 = vmul.f32 %v3077_v34, %v3072_v44 }
 0xd1f   : > { %v4400_v36 = vpop.eup %4399 }
 0xd20   : > { %v3073_v2 = vmul.f32 %v4400_v36, %v3025_v16  ;;  %v3084_v45 = vadd.f32 %v3083_v0, %v3078_v26 }
 0xd22   : > { %v3079_v11 = vmul.f32 %v3077_v34, %v3073_v2  ;;  %v3086_v41 = vadd.f32 %v3084_v45, %v5045_v59 }
 0xd24   : > { %v3085_v46 = vadd.f32 %v3083_v0, %v3079_v11 }
 0xd26   : > { %v3087_v31 = vadd.f32 %v3085_v46, %v5047_v60 }
 0xd28   : > { %v3088_v42 = vpack.c.bf16 %v3087_v31, %v3086_v41 }
 0xd2a   : > { %v3089_v30 = vunpack.c.l.bf16 %v3088_v42  ;;  %v3090_v48 = vunpack.c.h.bf16 %v3088_v42 }
 0xd2c   : > { %v3091_v25 = vsub.f32 %v3086_v41, %v3089_v30  ;;  %v3092_v50 = vsub.f32 %v3087_v31, %v3090_v48 }
 0xd2e   : > { %v3093_v54 = vpack.c.bf16 %v3092_v50, %v3091_v25 }
 0xd30   : > { %3126 = vmatprep.mubr.bf16.mxu1 %v3093_v54 }
 0xd31   : > { %3127 = vmatmul.mubr.bf16.vlgmr.msra.gmra.mxu1 %v3088_v42 }
 0xdf1   : > { %v3868_v56 = vpop.f32.mrf.mxu1 }
 0xdf3   : > { %v3869_v58 = vpop.f32.mrf.mxu1 }
 0xdf4   : > { %v3870_v51 = vadd.f32 %v3869_v58, %v3868_v56 }
 0xdf5   : > { %v3871_v43 = vpop.f32.mrf.mxu1 }
 0xdf6   : > { %v3135_v55 = vsub.f32 %v3086_v41, %v3870_v51 }
 0xdf7   : > { %v3872_v61 = vpop.f32.mrf.mxu1 }
 0xdf8   : > { %v3873_v62 = vadd.f32 %v3872_v61, %v3871_v43  ;;  %v3137_v3 = vmul.f32 %v3135_v55, %v3135_v55 }
 0xdfa   : > { %v3136_v57 = vsub.f32 %v3087_v31, %v3873_v62 }
 0xdfc   : > { %v3138_v59 = vmul.f32 %v3136_v57, %v3136_v57 }
 0xdfe   : > { %v3139_v27 = vpack.c.bf16 %v3138_v59, %v3137_v3 }
 0xe00   : > { %4000 = vmatmul.mubr.bf16.vlgmr.msra.gmra.mxu0 %v3139_v27 }
 0xec0   : > { %v3174_v60 = vpop.f32.mrf.mxu0 }
 0xec1   : > { %v3175_v13 = vadd.f32 1e-05, %v3174_v60 }
 0xec2   : > { %v4001_v4 = vpop.f32.mrf.mxu0 }
 0xec3   : > { %4401 = vrsqrt.f32 %v3175_v13 }
 0xec4   : > { %v3177_v5 = vpop.f32.mrf.mxu0 }
 0xec5   : > { %v3178_v49 = vadd.f32 1e-05, %v3177_v5 }
 0xec6   : > { %v4002_v53 = vpop.f32.mrf.mxu0 }
 0xec7   : > { %4403 = vrsqrt.f32 %v3178_v49 }
 0xed0   : > { %v4402_v47 = vpop.eup %4401 }
 0xed1   : > { %v3183_v21 = vmul.f32 %v4402_v47, %v3135_v55 }
 0xed3   : > { %v3189_v7 = vmul.f32 %v3188_v6, %v3183_v21 }
 0xed4   : > { %v4404_v8 = vpop.eup %4403 }
 0xed5   : > { %v3195_v38 = vadd.f32 %v3194_v14, %v3189_v7  ;;  %v3184_v63 = vmul.f32 %v4404_v8, %v3136_v57 }
 0xed7   : > { %v3190_v1 = vmul.f32 %v3188_v6, %v3184_v63  ;;  %3197 = vst [vmem:[%s381_s9] sm:$0xff] %v3195_v38 }
 0xed9   : > { %v3196_v29 = vadd.f32 %v3194_v14, %v3190_v1 }
 0xedb   : > { %3198 = vst [vmem:[%s381_s9 + $0x8] sm:$0xff] %v3196_v29 }
 0xedc   : > { %4630 = shalt.err (!%p4627_p3)
}
 0xedd   : > { %s4631_s19 = scalar_lea.hbm %s5353_s14, 256  ;;  %s4635_s17 = scalar_lea.hbm %s5405_s7, 512 }
 0xede   : > { %p4632_p4 = scmp.ne.s32.totalorder %s5353_s14, %s4631_s19  ;;  %p4636_p0 = scmp.lt.s32.totalorder %s5353_s14, %s5405_s7 }
 0xedf   : > { %p4637_p7 = scmp.lt.s32.totalorder %s4635_s17, %s4631_s19 }
 0xee0   : > { %p4633_p6 = pnand %p4632_p4, %p5432_p8 }
 0xee1   : > { %p4638_p2 = por %p4637_p7, %p4636_p0 }
 0xee2   : > { %p4634_p12 = pneg %p4633_p6 }
 0xee4   : > { %p4639_p9 = pnand %p4638_p2, %p4634_p12 }
 0xee6   : > { %4642 = shalt.err (!%p4639_p9)
}
 0xee7   : > { %s4712_s22 = smov 128   ;;  %s4713_s16 = smov 8  }
 0xee8   : > { %4029 = dma.vmem_to_hbm [thread:$0]  (%p5432_p8), %s5355_s23, 256, %s5353_s14, %s3200_s13, %s4712_s22, %s4712_s22, %s4713_s16  }
 0xee9 PF: > { %s3228_s28 = sand.u32 1, %s4681_s24   ;;  %p5433_p10 = scmp.ne.s32.totalorder %s5420_s10, 0 }
 0xeea   : > { %p5434_p11 = scmp.ge.s32.totalorder %s4693_s27, 2  ;;  %s3229_s30 = scalar_lea.sflag [#allocation4], %s3228_s28 }
 0xeec   : > { %p4055_p13 = pnand %p5434_p11, %p5433_p10 }
 0xeee   : > { %p4056_p5 = pneg %p4055_p13 }
 0xef0   : > { %4676 = dma.done.wait (%p4056_p5), %s3229_s30, 256  }
 0xef1   : > { %4678 = vsyncadd (%p4056_p5), %s3229_s30, 4294967040  ;;  %p23_p1 = scmp.ge.s32.totalorder %s4865_s11, 4   ;;  %s5435_s24 = smov %s4685_s25 }
 0xef2   : > { %s5436_s25 = smov %s4689_s26  ;;  %s5437_s26 = smov %s4876_s21 }
 0xef3   : > { %s5438_s27 = smov %s4865_s11  ;;  %25 = sbr.rel (!%p23_p1) target bundleno = 10 (0xa), region = 121 }
 0xef8   :  { %3234 = vsyncpa [#allocation3], 1 }
 0xef9   :  { %3236 = vsyncpa [#allocation3 + $0x1], 1 }
 0xefa   :  { %3237 = vsyncpa [#allocation6], 1 }
 0xefb   :  { %3238 = vsyncpa [#allocation9], 1 }
 0xefc   :  { %3239 = vsyncpa [#allocation12], 1 }
 0xefd   :  { %3240 = vsyncpa [#allocation4], 1 }
 0xefe   :  { %3242 = vsyncpa [#allocation4 + $0x1], 1 }

</bundles_post_ra>
